<compile_context>
chip_gen: v7x
topology: tpu7x:2x2x1
jax: 0.10.0
libtpu: 0.0.40
codegen_flags: <defaults>
</compile_context>

<pallas_src>
import jax
import jax.numpy as jnp
from jax.experimental import pallas as pl
from jax.experimental.pallas import tpu as pltpu


# ----------------------------------------------------------------------------
# Fused backbone kernel: one grid step processes a batch tile of every block
# and writes four block outputs directly (no in-kernel lane concat).
# ----------------------------------------------------------------------------
def _backbone_kernel(x_ref, emb_ref, seq_ref, qt_ref,
                     w1_ref, b1_ref, w2_ref, b2_ref,
                     wqbd_ref, wsbd_ref, wqsbd_ref, ab1_ref,
                     sscore_ref, expand_ref, rsum_ref,
                     mlp_ref, fm_ref, dlrm_ref, din_ref):
    f32 = jnp.float32

    # ---- MLP block: relu(relu(x @ W1 + b1) @ W2 + b2), x = [deep | wide] ----
    h = jnp.dot(x_ref[...], w1_ref[...], preferred_element_type=f32) + b1_ref[...]
    h = jnp.maximum(h, 0.0)
    mlp_ref[...] = jnp.maximum(
        jnp.dot(h, w2_ref[...], preferred_element_type=f32) + b2_ref[...], 0.0)

    # ---- FM + DLRM from the flattened emb tile [bt, F*K] --------------------
    e = emb_ref[...]
    num_k = fm_ref.shape[1]
    num_fields = e.shape[1] // num_k
    fields = [e[:, f * num_k:(f + 1) * num_k] for f in range(num_fields)]

    # FM: 0.5 * ((sum_f e)^2 - sum_f e^2)
    s_sum = fields[0]
    s_sq = fields[0] * fields[0]
    for f in range(1, num_fields):
        s_sum = s_sum + fields[f]
        s_sq = s_sq + fields[f] * fields[f]
    fm_ref[...] = 0.5 * (s_sum * s_sum - s_sq)

    # DLRM: upper-triangular (k=1) pairwise dot interactions.  F=4 -> only 6
    # small lane reductions; fine on all gens (XLU pressure only grows ~F^2).
    cols = []
    for i in range(num_fields):
        for j in range(i + 1, num_fields):
            cols.append(jnp.sum(fields[i] * fields[j], axis=-1, keepdims=True))
    dlrm_ref[...] = jnp.concatenate(cols, axis=-1)

    # ---- DIN block: target attention, fully lane-dense ----------------------
    # seq_ref / qt_ref are [bt, T*D] (128 lanes).  The [q, s, q-s, q*s] concat
    # is folded into block-diagonal weights, so each projection is one K=128
    # MXU push producing all T timesteps at once.
    seqf = seq_ref[...]                                     # [bt, T*D]
    qt = qt_ref[...]                                        # [bt, T*D]
    qs = qt * seqf                                          # VPU
    hatt = jnp.dot(seqf, wsbd_ref[...], preferred_element_type=f32)
    hatt = hatt + jnp.dot(qs, wqsbd_ref[...], preferred_element_type=f32)
    hatt = hatt + jnp.dot(qt, wqbd_ref[...], preferred_element_type=f32)
    hatt = jnp.maximum(hatt + ab1_ref[...], 0.0)            # [bt, T*HA]

    # Per-timestep score: relu(h) @ block-diag(w2) -> [bt, T]; din_b2 cancels
    # under the softmax (shift invariance), so it is intentionally dropped.
    scores = jnp.dot(hatt, sscore_ref[...], preferred_element_type=f32)
    m = jnp.max(scores, axis=-1, keepdims=True)
    ew = jnp.exp(scores - m)
    att = ew / jnp.sum(ew, axis=-1, keepdims=True)          # exact divide

    # Broadcast weights to [bt, T*D] and sum over timesteps, both as matmuls
    # against tiny 0/1 selection matrices (no reshapes / sublane shuffles).
    att_rep = jnp.dot(att, expand_ref[...], preferred_element_type=f32)
    din_ref[...] = jnp.dot(att_rep * seqf, rsum_ref[...],
                           preferred_element_type=f32)


def _pick_batch_tile(batch, max_tile=1024):
    """Fixed row tile: big (amortize ~0.35us/step), multiple of 8, and small
    enough that the grid has >= 2 steps when batch >= 16 so the parallel batch
    axis can shard across v7x's two TensorCores.  Tail blocks are partial."""
    if batch <= 8:
        return batch
    half = (batch // 2 // 8) * 8          # largest multiple of 8 <= batch/2
    return max(8, min(max_tile, half))


def backbone_fused(x, emb_flat, seq_flat, q_tiled,
                   mlp_w1, mlp_b1, mlp_w2, mlp_b2,
                   din_wq_bd, din_ws_bd, din_wqs_bd, din_b1_rep,
                   din_score_sel, din_expand_sel, din_timesum_sel,
                   num_fields):
    B, in_feat = x.shape
    fk = emb_flat.shape[1]
    td = seq_flat.shape[1]
    emb_dim = fk // num_fields
    n_pairs = num_fields * (num_fields - 1) // 2
    h1 = mlp_w1.shape[1]
    h2 = mlp_w2.shape[1]
    tha = din_wq_bd.shape[1]
    seq_dim = din_timesum_sel.shape[1]
    n_time = din_score_sel.shape[1]

    bt = _pick_batch_tile(B)
    grid = (pl.cdiv(B, bt),)

    batch2 = lambda b: (b, 0)
    const2 = lambda b: (0, 0)

    return pl.pallas_call(
        _backbone_kernel,
        out_shape=(
            jax.ShapeDtypeStruct((B, h2), jnp.float32),       # mlp
            jax.ShapeDtypeStruct((B, emb_dim), jnp.float32),  # fm
            jax.ShapeDtypeStruct((B, n_pairs), jnp.float32),  # dlrm
            jax.ShapeDtypeStruct((B, seq_dim), jnp.float32),  # din
        ),
        grid=grid,
        in_specs=[
            pl.BlockSpec((bt, in_feat), batch2),
            pl.BlockSpec((bt, fk), batch2),
            pl.BlockSpec((bt, td), batch2),
            pl.BlockSpec((bt, td), batch2),
            pl.BlockSpec((in_feat, h1), const2),
            pl.BlockSpec((1, h1), const2),
            pl.BlockSpec((h1, h2), const2),
            pl.BlockSpec((1, h2), const2),
            pl.BlockSpec((td, tha), const2),
            pl.BlockSpec((td, tha), const2),
            pl.BlockSpec((td, tha), const2),
            pl.BlockSpec((1, tha), const2),
            pl.BlockSpec((tha, n_time), const2),
            pl.BlockSpec((n_time, td), const2),
            pl.BlockSpec((td, seq_dim), const2),
        ],
        out_specs=[
            pl.BlockSpec((bt, h2), batch2),
            pl.BlockSpec((bt, emb_dim), batch2),
            pl.BlockSpec((bt, n_pairs), batch2),
            pl.BlockSpec((bt, seq_dim), batch2),
        ],
        compiler_params=pltpu.CompilerParams(
            dimension_semantics=("parallel",)),
    )(x, emb_flat, seq_flat, q_tiled,
      mlp_w1, mlp_b1, mlp_w2, mlp_b2,
      din_wq_bd, din_ws_bd, din_wqs_bd, din_b1_rep,
      din_score_sel, din_expand_sel, din_timesum_sel)


# ----------------------------------------------------------------------------
# Backbone wrapper with a fixed synthetic config (one block per module type).
#   "mlp_block"  : MLP over feature groups ["deep", "wide"]      -> [B, 32]
#   "fm_block"   : FM   over feature group  "emb"  [B, F, K]     -> [B, K]
#   "dlrm_block" : DLRM over feature group  "emb"  [B, F, K]     -> [B, F*(F-1)/2]
#   "din_block"  : DIN  over feature group  "seq"  (seq + query) -> [B, D]
# backbone_output = concat(block outputs, dim=1); block_outputs dict returned.
# ----------------------------------------------------------------------------
def _glorot(key, shape):
    fan_in, fan_out = shape
    lim = (6.0 / (fan_in + fan_out)) ** 0.5
    return jax.random.uniform(key, shape, jnp.float32, -lim, lim)


class BackbonePallas:
    # TODO(synk): protobuf BackboneConfig / FeatureGroup.build_group_input have no
    # Pallas equivalent; replaced by this fixed synthetic block list + dict batch.
    def __init__(self, key, deep_dim=24, wide_dim=8, num_fields=4, emb_dim=8,
                 seq_len=8, seq_dim=16, mlp_hidden=(64, 32), att_hidden=32):
        k = jax.random.split(key, 4)
        self.dims = dict(deep=deep_dim, wide=wide_dim, F=num_fields, K=emb_dim,
                         T=seq_len, D=seq_dim)
        in_feat = deep_dim + wide_dim
        # Raw parameters (same layout as the torch module).
        self.mlp_w1 = _glorot(k[0], (in_feat, mlp_hidden[0]))
        self.mlp_b1 = jnp.zeros((mlp_hidden[0],), jnp.float32)
        self.mlp_w2 = _glorot(k[1], (mlp_hidden[0], mlp_hidden[1]))
        self.mlp_b2 = jnp.zeros((mlp_hidden[1],), jnp.float32)
        self.din_w1 = _glorot(k[2], (4 * seq_dim, att_hidden))
        self.din_b1 = jnp.zeros((att_hidden,), jnp.float32)
        self.din_w2 = _glorot(k[3], (att_hidden, 1))
        self.din_b2 = jnp.zeros((1,), jnp.float32)

        # ---- pre-folded / block-diagonal weights used by the fused kernel ----
        D, T, HA = seq_dim, seq_len, att_hidden
        wq = self.din_w1[0:D] + self.din_w1[2 * D:3 * D]        # q and (q - s) fold
        ws = self.din_w1[D:2 * D] - self.din_w1[2 * D:3 * D]
        wqs = self.din_w1[3 * D:4 * D]
        eye_t = jnp.eye(T, dtype=jnp.float32)
        self._din_wq_bd = jnp.kron(eye_t, wq)                   # [T*D, T*HA]
        self._din_ws_bd = jnp.kron(eye_t, ws)
        self._din_wqs_bd = jnp.kron(eye_t, wqs)
        self._din_b1_rep = jnp.tile(self.din_b1, T).reshape(1, T * HA)
        self._din_score_sel = jnp.kron(eye_t, self.din_w2)      # [T*HA, T]
        self._din_expand_sel = jnp.kron(eye_t, jnp.ones((1, D), jnp.float32))
        self._din_timesum_sel = jnp.kron(jnp.ones((T, 1), jnp.float32),
                                         jnp.eye(D, dtype=jnp.float32))
        # din_b2 intentionally unused in the kernel: softmax(s + c) == softmax(s).
        self._mlp_b1_row = self.mlp_b1.reshape(1, -1)
        self._mlp_b2_row = self.mlp_b2.reshape(1, -1)

    def __call__(self, batch):
        d = self.dims
        B = batch["deep"].shape[0]
        # XLA-side layout plumbing (done once per call, cheap):
        x = jnp.concatenate([batch["deep"], batch["wide"]], axis=1)   # [B, 32]
        emb_flat = batch["emb"].reshape(B, d["F"] * d["K"])           # [B, 32]
        seq_flat = batch["seq"].reshape(B, d["T"] * d["D"])           # [B, 128]
        q_tiled = jnp.tile(batch["query"], (1, d["T"]))               # [B, 128]

        o_mlp, o_fm, o_dlrm, o_din = backbone_fused(
            x, emb_flat, seq_flat, q_tiled,
            self.mlp_w1, self._mlp_b1_row, self.mlp_w2, self._mlp_b2_row,
            self._din_wq_bd, self._din_ws_bd, self._din_wqs_bd,
            self._din_b1_rep, self._din_score_sel, self._din_expand_sel,
            self._din_timesum_sel, num_fields=d["F"])

        block_outputs = {
            "mlp_block": o_mlp,
            "fm_block": o_fm,
            "dlrm_block": o_dlrm,
            "din_block": o_din,
        }
        backbone_output = jnp.concatenate([o_mlp, o_fm, o_dlrm, o_din], axis=1)
        return backbone_output, block_outputs

    # Pure-JAX reference of the original forward pass (for correctness check).
    def reference(self, batch):
        with jax.default_matmul_precision("highest"):
            x = jnp.concatenate([batch["deep"], batch["wide"]], axis=1)
            h = jax.nn.relu(x @ self.mlp_w1 + self.mlp_b1)
            mlp_out = jax.nn.relu(h @ self.mlp_w2 + self.mlp_b2)

            emb = batch["emb"]
            s = emb.sum(axis=1)
            sq = (emb * emb).sum(axis=1)
            fm_out = 0.5 * (s * s - sq)

            F = emb.shape[1]
            inter = jnp.einsum("bik,bjk->bij", emb, emb)
            iu, ju = jnp.triu_indices(F, k=1)
            dlrm_out = inter[:, iu, ju]

            seq, query = batch["seq"], batch["query"]
            qt = jnp.broadcast_to(query[:, None, :], seq.shape)
            att_in = jnp.concatenate([qt, seq, qt - seq, qt * seq], axis=-1)
            hh = jax.nn.relu(att_in @ self.din_w1 + self.din_b1)
            sc = hh @ self.din_w2 + self.din_b2          # [B, T, 1]
            w = jax.nn.softmax(sc, axis=1)
            din_out = (w * seq).sum(axis=1)

            return jnp.concatenate([mlp_out, fm_out, dlrm_out, din_out], axis=1)


if __name__ == "__main__":
    key = jax.random.PRNGKey(0)
    k_param, k_deep, k_wide, k_emb, k_seq, k_q = jax.random.split(key, 6)

    B = 2
    model = BackbonePallas(k_param)
    d = model.dims

    batch = {
        "deep":  jax.random.normal(k_deep, (B, d["deep"]), jnp.float32),
        "wide":  jax.random.normal(k_wide, (B, d["wide"]), jnp.float32),
        "emb":   jax.random.normal(k_emb,  (B, d["F"], d["K"]), jnp.float32),
        "seq":   jax.random.normal(k_seq,  (B, d["T"], d["D"]), jnp.float32),
        "query": jax.random.normal(k_q,    (B, d["D"]), jnp.float32),
    }

    out, block_outputs = model(batch)
    out = jax.block_until_ready(out)
    for v in block_outputs.values():
        jax.block_until_ready(v)

    expected_dim = 32 + d["K"] + d["F"] * (d["F"] - 1) // 2 + d["D"]
    assert out.shape == (B, expected_dim), out.shape
    assert block_outputs["mlp_block"].shape == (B, 32)
    assert block_outputs["fm_block"].shape == (B, d["K"])
    assert block_outputs["dlrm_block"].shape == (B, d["F"] * (d["F"] - 1) // 2)
    assert block_outputs["din_block"].shape == (B, d["D"])
    assert bool(jnp.all(jnp.isfinite(out)))

    # Tolerance check vs. the f32 pure-JAX reference.  The DIN softmax now uses
    # an exact divide; the residual gap is MXU-vs-XLA f32 matmul rounding.
    ref = jax.block_until_ready(model.reference(batch))
    assert bool(jnp.allclose(out, ref, rtol=5e-3, atol=5e-3)), \
        float(jnp.max(jnp.abs(out - ref)))

    print("KERNEL_OK")
</pallas_src>

<mosaic_0001>
module attributes {stable_mosaic.version = 11 : i64} {
  func.func @_backbone_kernel(%arg0: i32, %arg1: memref<2x32xf32, #tpu.memory_space<vmem>>, %arg2: memref<2x32xf32, #tpu.memory_space<vmem>>, %arg3: memref<2x128xf32, #tpu.memory_space<vmem>>, %arg4: memref<2x128xf32, #tpu.memory_space<vmem>>, %arg5: memref<32x64xf32, #tpu.memory_space<vmem>>, %arg6: memref<1x64xf32, #tpu.memory_space<vmem>>, %arg7: memref<64x32xf32, #tpu.memory_space<vmem>>, %arg8: memref<1x32xf32, #tpu.memory_space<vmem>>, %arg9: memref<128x256xf32, #tpu.memory_space<vmem>>, %arg10: memref<128x256xf32, #tpu.memory_space<vmem>>, %arg11: memref<128x256xf32, #tpu.memory_space<vmem>>, %arg12: memref<1x256xf32, #tpu.memory_space<vmem>>, %arg13: memref<256x8xf32, #tpu.memory_space<vmem>>, %arg14: memref<8x128xf32, #tpu.memory_space<vmem>>, %arg15: memref<128x16xf32, #tpu.memory_space<vmem>>, %arg16: memref<2x32xf32, #tpu.memory_space<vmem>>, %arg17: memref<2x8xf32, #tpu.memory_space<vmem>>, %arg18: memref<2x6xf32, #tpu.memory_space<vmem>>, %arg19: memref<2x16xf32, #tpu.memory_space<vmem>>) attributes {dimension_semantics = [#tpu.dimension_semantics<parallel>], iteration_bounds = array<i64: 1>, scalar_prefetch = 0 : i64, scratch_operands = 0 : i64, tpu.core_type = #tpu.core_type<tc>, window_params = [{transform_indices = @transform_0, window_bounds = array<i64: 2, 32>}, {transform_indices = @transform_1, window_bounds = array<i64: 2, 32>}, {transform_indices = @transform_2, window_bounds = array<i64: 2, 128>}, {transform_indices = @transform_3, window_bounds = array<i64: 2, 128>}, {pipeline_mode = #tpu.pipeline_mode<synchronous>, transform_indices = @transform_4, window_bounds = array<i64: 32, 64>}, {pipeline_mode = #tpu.pipeline_mode<synchronous>, transform_indices = @transform_5, window_bounds = array<i64: 1, 64>}, {pipeline_mode = #tpu.pipeline_mode<synchronous>, transform_indices = @transform_6, window_bounds = array<i64: 64, 32>}, {pipeline_mode = #tpu.pipeline_mode<synchronous>, transform_indices = @transform_7, window_bounds = array<i64: 1, 32>}, {pipeline_mode = #tpu.pipeline_mode<synchronous>, transform_indices = @transform_8, window_bounds = array<i64: 128, 256>}, {pipeline_mode = #tpu.pipeline_mode<synchronous>, transform_indices = @transform_9, window_bounds = array<i64: 128, 256>}, {pipeline_mode = #tpu.pipeline_mode<synchronous>, transform_indices = @transform_10, window_bounds = array<i64: 128, 256>}, {pipeline_mode = #tpu.pipeline_mode<synchronous>, transform_indices = @transform_11, window_bounds = array<i64: 1, 256>}, {pipeline_mode = #tpu.pipeline_mode<synchronous>, transform_indices = @transform_12, window_bounds = array<i64: 256, 8>}, {pipeline_mode = #tpu.pipeline_mode<synchronous>, transform_indices = @transform_13, window_bounds = array<i64: 8, 128>}, {pipeline_mode = #tpu.pipeline_mode<synchronous>, transform_indices = @transform_14, window_bounds = array<i64: 128, 16>}, {transform_indices = @transform_15, window_bounds = array<i64: 2, 32>}, {transform_indices = @transform_16, window_bounds = array<i64: 2, 8>}, {transform_indices = @transform_17, window_bounds = array<i64: 2, 6>}, {transform_indices = @transform_18, window_bounds = array<i64: 2, 16>}]} {
    %c0 = arith.constant 0 : index
    %c0_0 = arith.constant 0 : index
    %0 = vector.load %arg1[%c0, %c0_0] : memref<2x32xf32, #tpu.memory_space<vmem>>, vector<2x32xf32>
    %c0_1 = arith.constant 0 : index
    %c0_2 = arith.constant 0 : index
    %1 = vector.load %arg5[%c0_1, %c0_2] : memref<32x64xf32, #tpu.memory_space<vmem>>, vector<32x64xf32>
    %cst = arith.constant dense<0.000000e+00> : vector<2x64xf32>
    %2 = tpu.matmul %0, %1, %cst {dimension_numbers = #tpu.dot_dimension_numbers<[1], [0], [0], [1], [0, 0, 1, 1], [], []>} : vector<2x32xf32>, vector<32x64xf32>, vector<2x64xf32> -> vector<2x64xf32>
    %c0_3 = arith.constant 0 : index
    %c0_4 = arith.constant 0 : index
    %3 = vector.load %arg6[%c0_3, %c0_4] : memref<1x64xf32, #tpu.memory_space<vmem>>, vector<1x64xf32>
    %4 = vector.broadcast %3 : vector<1x64xf32> to vector<2x64xf32>
    %5 = arith.addf %2, %4 : vector<2x64xf32>
    %cst_5 = arith.constant 0.000000e+00 : f32
    %6 = vector.broadcast %cst_5 : f32 to vector<2x64xf32>
    %7 = arith.maximumf %5, %6 : vector<2x64xf32>
    %c0_6 = arith.constant 0 : index
    %c0_7 = arith.constant 0 : index
    %8 = vector.load %arg7[%c0_6, %c0_7] : memref<64x32xf32, #tpu.memory_space<vmem>>, vector<64x32xf32>
    %cst_8 = arith.constant dense<0.000000e+00> : vector<2x32xf32>
    %9 = tpu.matmul %7, %8, %cst_8 {dimension_numbers = #tpu.dot_dimension_numbers<[1], [0], [0], [1], [0, 0, 1, 1], [], []>} : vector<2x64xf32>, vector<64x32xf32>, vector<2x32xf32> -> vector<2x32xf32>
    %c0_9 = arith.constant 0 : index
    %c0_10 = arith.constant 0 : index
    %10 = vector.load %arg8[%c0_9, %c0_10] : memref<1x32xf32, #tpu.memory_space<vmem>>, vector<1x32xf32>
    %11 = vector.broadcast %10 : vector<1x32xf32> to vector<2x32xf32>
    %12 = arith.addf %9, %11 : vector<2x32xf32>
    %cst_11 = arith.constant 0.000000e+00 : f32
    %13 = vector.broadcast %cst_11 : f32 to vector<2x32xf32>
    %14 = arith.maximumf %12, %13 : vector<2x32xf32>
    %c0_12 = arith.constant 0 : index
    %c0_13 = arith.constant 0 : index
    %15 = vector.load %arg16[%c0_12, %c0_13] : memref<2x32xf32, #tpu.memory_space<vmem>>, vector<2x32xf32>
    tpu.vector_store %arg16[%c0_12, %c0_13], %14 {strides = array<i32>} : memref<2x32xf32, #tpu.memory_space<vmem>>, vector<2x32xf32>,
    %c0_14 = arith.constant 0 : index
    %c0_15 = arith.constant 0 : index
    %16 = vector.load %arg2[%c0_14, %c0_15] : memref<2x32xf32, #tpu.memory_space<vmem>>, vector<2x32xf32>
    %17 = vector.extract_strided_slice %16 {offsets = [0, 0], sizes = [2, 8], strides = [1, 1]} : vector<2x32xf32> to vector<2x8xf32>
    %18 = vector.extract_strided_slice %16 {offsets = [0, 8], sizes = [2, 8], strides = [1, 1]} : vector<2x32xf32> to vector<2x8xf32>
    %19 = vector.extract_strided_slice %16 {offsets = [0, 16], sizes = [2, 8], strides = [1, 1]} : vector<2x32xf32> to vector<2x8xf32>
    %20 = vector.extract_strided_slice %16 {offsets = [0, 24], sizes = [2, 8], strides = [1, 1]} : vector<2x32xf32> to vector<2x8xf32>
    %21 = arith.mulf %17, %17 : vector<2x8xf32>
    %22 = arith.addf %17, %18 : vector<2x8xf32>
    %23 = arith.mulf %18, %18 : vector<2x8xf32>
    %24 = arith.addf %21, %23 : vector<2x8xf32>
    %25 = arith.addf %22, %19 : vector<2x8xf32>
    %26 = arith.mulf %19, %19 : vector<2x8xf32>
    %27 = arith.addf %24, %26 : vector<2x8xf32>
    %28 = arith.addf %25, %20 : vector<2x8xf32>
    %29 = arith.mulf %20, %20 : vector<2x8xf32>
    %30 = arith.addf %27, %29 : vector<2x8xf32>
    %31 = arith.mulf %28, %28 : vector<2x8xf32>
    %32 = arith.subf %31, %30 : vector<2x8xf32>
    %cst_16 = arith.constant 5.000000e-01 : f32
    %33 = vector.broadcast %cst_16 : f32 to vector<2x8xf32>
    %34 = arith.mulf %33, %32 : vector<2x8xf32>
    %c0_17 = arith.constant 0 : index
    %c0_18 = arith.constant 0 : index
    %35 = vector.load %arg17[%c0_17, %c0_18] : memref<2x8xf32, #tpu.memory_space<vmem>>, vector<2x8xf32>
    tpu.vector_store %arg17[%c0_17, %c0_18], %34 {strides = array<i32>} : memref<2x8xf32, #tpu.memory_space<vmem>>, vector<2x8xf32>,
    %36 = arith.mulf %17, %18 : vector<2x8xf32>
    %cst_19 = arith.constant dense<0.000000e+00> : vector<2xf32>
    %37 = vector.multi_reduction <add>, %36, %cst_19 [1] : vector<2x8xf32> to vector<2xf32>
    %38 = vector.shape_cast %37 : vector<2xf32> to vector<2x1xf32>
    %39 = arith.mulf %17, %19 : vector<2x8xf32>
    %cst_20 = arith.constant dense<0.000000e+00> : vector<2xf32>
    %40 = vector.multi_reduction <add>, %39, %cst_20 [1] : vector<2x8xf32> to vector<2xf32>
    %41 = vector.shape_cast %40 : vector<2xf32> to vector<2x1xf32>
    %42 = arith.mulf %17, %20 : vector<2x8xf32>
    %cst_21 = arith.constant dense<0.000000e+00> : vector<2xf32>
    %43 = vector.multi_reduction <add>, %42, %cst_21 [1] : vector<2x8xf32> to vector<2xf32>
    %44 = vector.shape_cast %43 : vector<2xf32> to vector<2x1xf32>
    %45 = arith.mulf %18, %19 : vector<2x8xf32>
    %cst_22 = arith.constant dense<0.000000e+00> : vector<2xf32>
    %46 = vector.multi_reduction <add>, %45, %cst_22 [1] : vector<2x8xf32> to vector<2xf32>
    %47 = vector.shape_cast %46 : vector<2xf32> to vector<2x1xf32>
    %48 = arith.mulf %18, %20 : vector<2x8xf32>
    %cst_23 = arith.constant dense<0.000000e+00> : vector<2xf32>
    %49 = vector.multi_reduction <add>, %48, %cst_23 [1] : vector<2x8xf32> to vector<2xf32>
    %50 = vector.shape_cast %49 : vector<2xf32> to vector<2x1xf32>
    %51 = arith.mulf %19, %20 : vector<2x8xf32>
    %cst_24 = arith.constant dense<0.000000e+00> : vector<2xf32>
    %52 = vector.multi_reduction <add>, %51, %cst_24 [1] : vector<2x8xf32> to vector<2xf32>
    %53 = vector.shape_cast %52 : vector<2xf32> to vector<2x1xf32>
    %54 = tpu.concatenate %38, %41, %44, %47, %50, %53 in 1 : vector<2x1xf32>, vector<2x1xf32>, vector<2x1xf32>, vector<2x1xf32>, vector<2x1xf32>, vector<2x1xf32> -> vector<2x6xf32>
    %c0_25 = arith.constant 0 : index
    %c0_26 = arith.constant 0 : index
    %55 = vector.load %arg18[%c0_25, %c0_26] : memref<2x6xf32, #tpu.memory_space<vmem>>, vector<2x6xf32>
    tpu.vector_store %arg18[%c0_25, %c0_26], %54 {strides = array<i32>} : memref<2x6xf32, #tpu.memory_space<vmem>>, vector<2x6xf32>,
    %c0_27 = arith.constant 0 : index
    %c0_28 = arith.constant 0 : index
    %56 = vector.load %arg3[%c0_27, %c0_28] : memref<2x128xf32, #tpu.memory_space<vmem>>, vector<2x128xf32>
    %c0_29 = arith.constant 0 : index
    %c0_30 = arith.constant 0 : index
    %57 = vector.load %arg4[%c0_29, %c0_30] : memref<2x128xf32, #tpu.memory_space<vmem>>, vector<2x128xf32>
    %58 = arith.mulf %57, %56 : vector<2x128xf32>
    %c0_31 = arith.constant 0 : index
    %c0_32 = arith.constant 0 : index
    %59 = vector.load %arg10[%c0_31, %c0_32] : memref<128x256xf32, #tpu.memory_space<vmem>>, vector<128x256xf32>
    %cst_33 = arith.constant dense<0.000000e+00> : vector<2x256xf32>
    %60 = tpu.matmul %56, %59, %cst_33 {dimension_numbers = #tpu.dot_dimension_numbers<[1], [0], [0], [1], [0, 0, 1, 1], [], []>} : vector<2x128xf32>, vector<128x256xf32>, vector<2x256xf32> -> vector<2x256xf32>
    %c0_34 = arith.constant 0 : index
    %c0_35 = arith.constant 0 : index
    %61 = vector.load %arg11[%c0_34, %c0_35] : memref<128x256xf32, #tpu.memory_space<vmem>>, vector<128x256xf32>
    %cst_36 = arith.constant dense<0.000000e+00> : vector<2x256xf32>
    %62 = tpu.matmul %58, %61, %cst_36 {dimension_numbers = #tpu.dot_dimension_numbers<[1], [0], [0], [1], [0, 0, 1, 1], [], []>} : vector<2x128xf32>, vector<128x256xf32>, vector<2x256xf32> -> vector<2x256xf32>
    %63 = arith.addf %60, %62 : vector<2x256xf32>
    %c0_37 = arith.constant 0 : index
    %c0_38 = arith.constant 0 : index
    %64 = vector.load %arg9[%c0_37, %c0_38] : memref<128x256xf32, #tpu.memory_space<vmem>>, vector<128x256xf32>
    %cst_39 = arith.constant dense<0.000000e+00> : vector<2x256xf32>
    %65 = tpu.matmul %57, %64, %cst_39 {dimension_numbers = #tpu.dot_dimension_numbers<[1], [0], [0], [1], [0, 0, 1, 1], [], []>} : vector<2x128xf32>, vector<128x256xf32>, vector<2x256xf32> -> vector<2x256xf32>
    %66 = arith.addf %63, %65 : vector<2x256xf32>
    %c0_40 = arith.constant 0 : index
    %c0_41 = arith.constant 0 : index
    %67 = vector.load %arg12[%c0_40, %c0_41] : memref<1x256xf32, #tpu.memory_space<vmem>>, vector<1x256xf32>
    %68 = vector.broadcast %67 : vector<1x256xf32> to vector<2x256xf32>
    %69 = arith.addf %66, %68 : vector<2x256xf32>
    %cst_42 = arith.constant 0.000000e+00 : f32
    %70 = vector.broadcast %cst_42 : f32 to vector<2x256xf32>
    %71 = arith.maximumf %69, %70 : vector<2x256xf32>
    %c0_43 = arith.constant 0 : index
    %c0_44 = arith.constant 0 : index
    %72 = vector.load %arg13[%c0_43, %c0_44] : memref<256x8xf32, #tpu.memory_space<vmem>>, vector<256x8xf32>
    %cst_45 = arith.constant dense<0.000000e+00> : vector<2x8xf32>
    %73 = tpu.matmul %71, %72, %cst_45 {dimension_numbers = #tpu.dot_dimension_numbers<[1], [0], [0], [1], [0, 0, 1, 1], [], []>} : vector<2x256xf32>, vector<256x8xf32>, vector<2x8xf32> -> vector<2x8xf32>
    %cst_46 = arith.constant dense<0xFF800000> : vector<2xf32>
    %74 = vector.multi_reduction <maximumf>, %73, %cst_46 [1] : vector<2x8xf32> to vector<2xf32>
    %75 = vector.shape_cast %74 : vector<2xf32> to vector<2x1xf32>
    %76 = vector.broadcast %75 : vector<2x1xf32> to vector<2x8xf32>
    %77 = arith.subf %73, %76 : vector<2x8xf32>
    %78 = math.exp %77 : vector<2x8xf32>
    %cst_47 = arith.constant dense<0.000000e+00> : vector<2xf32>
    %79 = vector.multi_reduction <add>, %78, %cst_47 [1] : vector<2x8xf32> to vector<2xf32>
    %80 = vector.shape_cast %79 : vector<2xf32> to vector<2x1xf32>
    %81 = vector.broadcast %80 : vector<2x1xf32> to vector<2x8xf32>
    %82 = arith.divf %78, %81 : vector<2x8xf32>
    %c0_48 = arith.constant 0 : index
    %c0_49 = arith.constant 0 : index
    %83 = vector.load %arg14[%c0_48, %c0_49] : memref<8x128xf32, #tpu.memory_space<vmem>>, vector<8x128xf32>
    %cst_50 = arith.constant dense<0.000000e+00> : vector<2x128xf32>
    %84 = tpu.matmul %82, %83, %cst_50 {dimension_numbers = #tpu.dot_dimension_numbers<[1], [0], [0], [1], [0, 0, 1, 1], [], []>} : vector<2x8xf32>, vector<8x128xf32>, vector<2x128xf32> -> vector<2x128xf32>
    %85 = arith.mulf %84, %56 : vector<2x128xf32>
    %c0_51 = arith.constant 0 : index
    %c0_52 = arith.constant 0 : index
    %86 = vector.load %arg15[%c0_51, %c0_52] : memref<128x16xf32, #tpu.memory_space<vmem>>, vector<128x16xf32>
    %cst_53 = arith.constant dense<0.000000e+00> : vector<2x16xf32>
    %87 = tpu.matmul %85, %86, %cst_53 {dimension_numbers = #tpu.dot_dimension_numbers<[1], [0], [0], [1], [0, 0, 1, 1], [], []>} : vector<2x128xf32>, vector<128x16xf32>, vector<2x16xf32> -> vector<2x16xf32>
    %c0_54 = arith.constant 0 : index
    %c0_55 = arith.constant 0 : index
    %88 = vector.load %arg19[%c0_54, %c0_55] : memref<2x16xf32, #tpu.memory_space<vmem>>, vector<2x16xf32>
    tpu.vector_store %arg19[%c0_54, %c0_55], %87 {strides = array<i32>} : memref<2x16xf32, #tpu.memory_space<vmem>>, vector<2x16xf32>,
    return
  }
  func.func @transform_0(%arg0: i32) -> (i32, i32) {
    %c0_i32 = arith.constant 0 : i32
    %c0_i32_0 = arith.constant 0 : i32
    return %arg0, %c0_i32 : i32, i32
  }
  func.func @transform_1(%arg0: i32) -> (i32, i32) {
    %c0_i32 = arith.constant 0 : i32
    %c0_i32_0 = arith.constant 0 : i32
    return %arg0, %c0_i32 : i32, i32
  }
  func.func @transform_2(%arg0: i32) -> (i32, i32) {
    %c0_i32 = arith.constant 0 : i32
    %c0_i32_0 = arith.constant 0 : i32
    return %arg0, %c0_i32 : i32, i32
  }
  func.func @transform_3(%arg0: i32) -> (i32, i32) {
    %c0_i32 = arith.constant 0 : i32
    %c0_i32_0 = arith.constant 0 : i32
    return %arg0, %c0_i32 : i32, i32
  }
  func.func @transform_4(%arg0: i32) -> (i32, i32) {
    %c0_i32 = arith.constant 0 : i32
    %c0_i32_0 = arith.constant 0 : i32
    %c0_i32_1 = arith.constant 0 : i32
    return %c0_i32, %c0_i32_0 : i32, i32
  }
  func.func @transform_5(%arg0: i32) -> (i32, i32) {
    %c0_i32 = arith.constant 0 : i32
    %c0_i32_0 = arith.constant 0 : i32
    %c0_i32_1 = arith.constant 0 : i32
    return %c0_i32, %c0_i32_0 : i32, i32
  }
  func.func @transform_6(%arg0: i32) -> (i32, i32) {
    %c0_i32 = arith.constant 0 : i32
    %c0_i32_0 = arith.constant 0 : i32
    %c0_i32_1 = arith.constant 0 : i32
    return %c0_i32, %c0_i32_0 : i32, i32
  }
  func.func @transform_7(%arg0: i32) -> (i32, i32) {
    %c0_i32 = arith.constant 0 : i32
    %c0_i32_0 = arith.constant 0 : i32
    %c0_i32_1 = arith.constant 0 : i32
    return %c0_i32, %c0_i32_0 : i32, i32
  }
  func.func @transform_8(%arg0: i32) -> (i32, i32) {
    %c0_i32 = arith.constant 0 : i32
    %c0_i32_0 = arith.constant 0 : i32
    %c0_i32_1 = arith.constant 0 : i32
    return %c0_i32, %c0_i32_0 : i32, i32
  }
  func.func @transform_9(%arg0: i32) -> (i32, i32) {
    %c0_i32 = arith.constant 0 : i32
    %c0_i32_0 = arith.constant 0 : i32
    %c0_i32_1 = arith.constant 0 : i32
    return %c0_i32, %c0_i32_0 : i32, i32
  }
  func.func @transform_10(%arg0: i32) -> (i32, i32) {
    %c0_i32 = arith.constant 0 : i32
    %c0_i32_0 = arith.constant 0 : i32
    %c0_i32_1 = arith.constant 0 : i32
    return %c0_i32, %c0_i32_0 : i32, i32
  }
  func.func @transform_11(%arg0: i32) -> (i32, i32) {
    %c0_i32 = arith.constant 0 : i32
    %c0_i32_0 = arith.constant 0 : i32
    %c0_i32_1 = arith.constant 0 : i32
    return %c0_i32, %c0_i32_0 : i32, i32
  }
  func.func @transform_12(%arg0: i32) -> (i32, i32) {
    %c0_i32 = arith.constant 0 : i32
    %c0_i32_0 = arith.constant 0 : i32
    %c0_i32_1 = arith.constant 0 : i32
    return %c0_i32, %c0_i32_0 : i32, i32
  }
  func.func @transform_13(%arg0: i32) -> (i32, i32) {
    %c0_i32 = arith.constant 0 : i32
    %c0_i32_0 = arith.constant 0 : i32
    %c0_i32_1 = arith.constant 0 : i32
    return %c0_i32, %c0_i32_0 : i32, i32
  }
  func.func @transform_14(%arg0: i32) -> (i32, i32) {
    %c0_i32 = arith.constant 0 : i32
    %c0_i32_0 = arith.constant 0 : i32
    %c0_i32_1 = arith.constant 0 : i32
    return %c0_i32, %c0_i32_0 : i32, i32
  }
  func.func @transform_15(%arg0: i32) -> (i32, i32) {
    %c0_i32 = arith.constant 0 : i32
    %c0_i32_0 = arith.constant 0 : i32
    return %arg0, %c0_i32 : i32, i32
  }
  func.func @transform_16(%arg0: i32) -> (i32, i32) {
    %c0_i32 = arith.constant 0 : i32
    %c0_i32_0 = arith.constant 0 : i32
    return %arg0, %c0_i32 : i32, i32
  }
  func.func @transform_17(%arg0: i32) -> (i32, i32) {
    %c0_i32 = arith.constant 0 : i32
    %c0_i32_0 = arith.constant 0 : i32
    return %arg0, %c0_i32 : i32, i32
  }
  func.func @transform_18(%arg0: i32) -> (i32, i32) {
    %c0_i32 = arith.constant 0 : i32
    %c0_i32_0 = arith.constant 0 : i32
    return %arg0, %c0_i32 : i32, i32
  }
}

</mosaic_0001>

<bundles_post_ra>
// kernel: tpu_custom_call.1
= control target key start
LH: loop header
LB: loop body
LE: loop exit
PB: predicated region body
PF: predicated region fallthrough
CT: control target
= control target key end

     0   :  { %s2330_s0 = inlined_call_operand.hbm [shape: f32[2,32], index: 0, kind: input, shape index: {}]   ;;  %s2331_s1 = inlined_call_operand.hbm [shape: f32[2,32], index: 1, kind: input, shape index: {}]   ;;  %s2332_s2 = inlined_call_operand.vmem [shape: f32[2,128], index: 2, kind: input, shape index: {}]   ;;  %s2333_s3 = inlined_call_operand.hbm [shape: f32[2,128], index: 3, kind: input, shape index: {}]   ;;  %s2334_s4 = inlined_call_operand.hbm [shape: f32[32,64], index: 4, kind: input, shape index: {}]   ;;  %s2335_s5 = inlined_call_operand.hbm [shape: f32[1,64], index: 5, kind: input, shape index: {}]   ;;  %s2336_s6 = inlined_call_operand.vmem [shape: f32[64,32], index: 6, kind: input, shape index: {}]   ;;  %s2337_s7 = inlined_call_operand.hbm [shape: f32[1,32], index: 7, kind: input, shape index: {}]   ;;  %s2338_s8 = inlined_call_operand.vmem [shape: f32[128,256], index: 8, kind: input, shape index: {}]   ;;  %s2339_s9 = inlined_call_operand.vmem [shape: f32[128,256], index: 9, kind: input, shape index: {}]   ;;  %s2340_s10 = inlined_call_operand.hbm [shape: f32[128,256], index: 10, kind: input, shape index: {}]   ;;  %s2341_s11 = inlined_call_operand.vmem [shape: f32[1,256], index: 11, kind: input, shape index: {}]   ;;  %s2342_s12 = inlined_call_operand.vmem [shape: f32[256,8], index: 12, kind: input, shape index: {}]   ;;  %s2343_s13 = inlined_call_operand.vmem [shape: f32[8,128], index: 13, kind: input, shape index: {}]   ;;  %s2344_s14 = inlined_call_operand.vmem [shape: f32[128,16], index: 14, kind: input, shape index: {}]   ;;  %s2345_s15 = inlined_call_operand.hbm [shape: f32[2,32], index: 15, kind: output, shape index: {0}]   ;;  %s2346_s16 = inlined_call_operand.hbm [shape: f32[2,8], index: 16, kind: output, shape index: {1}]   ;;  %s2347_s17 = inlined_call_operand.hbm [shape: f32[2,6], index: 17, kind: output, shape index: {2}]   ;;  %s2348_s18 = inlined_call_operand.hbm [shape: f32[2,16], index: 18, kind: output, shape index: {3}]  }
   0x1   :  { %2352 = sst [smem:[#allocation27_spill]] %s2330_s0 }
   0x2   :  { %2353 = sst [smem:[#allocation28_spill]] %s2331_s1 }
   0x3   :  { %2354 = sst [smem:[#allocation29_spill]] %s2332_s2 }
   0x4   :  { %2355 = sst [smem:[#allocation30_spill]] %s2348_s18 }
   0x5   :  { %24 = vsyncpa [#allocation3], 0 }
   0x6   :  { %25 = vsyncpa [#allocation6], 0 }
   0x7   :  { %26 = vsyncpa [#allocation9], 0 }
   0x8   :  { %27 = vsyncpa [#allocation12], 0 }
   0x9   :  { %28 = vsyncpa [#allocation4], 0 }
   0xa   :  { %29 = vsyncpa [#allocation16], 0 }
   0xb   :  { %30 = vsyncpa [#allocation19], 0  ;;  %s1662_s27 = smov [#allocation5]   ;;  %s1663_s29 = smov [#allocation8]  }
   0xc   :  { %s47_s28 = sshll.u32 %s1662_s27, 4  ;;  %s68_s30 = sshll.u32 %s1663_s29, 4  ;;  %s48_s28 = int_to_ptr.vmem [resolvable:$true] %s47_s28  ;;  %s1778_s30 = int_to_ptr.vmem [resolvable:$true] %s68_s30 }
   0xd   :  { %s2356_s1 = sld [smem:[#allocation28_spill]] }
  0x13   :  { %s1406_s20 = scalar_lea.hbm %s2356_s1, 32 }
  0x14   :  { %p1407_p0 = scmp.ne.s32.totalorder %s2356_s1, %s1406_s20  ;;  %p1410_p1 = scmp.lt.u32.totalorder %s1406_s20, %s2356_s1 }
  0x16   :  { %p1412_p2 = pnand %p1410_p1, %p1407_p0 }
  0x18   :  { %1415 = shalt.err (!%p1412_p2)
}
  0x19   :  { %s1416_s24 = scalar_lea.vmem %s48_s28, 32  ;;  %p1421_p4 = scmp.lt.s32.totalorder %s48_s28, %s48_s28 }
  0x1a   :  { %p1417_p3 = scmp.ne.s32.totalorder %s48_s28, %s1416_s24  ;;  %p1422_p5 = scmp.lt.s32.totalorder %s1416_s24, %s1416_s24 }
  0x1c   :  { %p1423_p6 = por %p1422_p5, %p1421_p4 }
  0x1e   :  { %p1424_p7 = pnand %p1423_p6, %p1417_p3 }
  0x20   :  { %1427 = shalt.err (!%p1424_p7)
}
  0x21   :  { %50 = dma.hbm_to_vmem [thread:$0]  %s2356_s1, 32, %s48_s28, [#allocation6]  }
  0x22   :  { %s1428_s0 = scalar_lea.hbm %s2334_s4, 512 }
  0x23   :  { %p1429_p8 = scmp.ne.s32.totalorder %s2334_s4, %s1428_s0  ;;  %p1432_p9 = scmp.lt.u32.totalorder %s1428_s0, %s2334_s4 }
  0x25   :  { %p1434_p10 = pnand %p1432_p9, %p1429_p8 }
  0x27   :  { %1437 = shalt.err (!%p1434_p10)
}
  0x28   :  { %s1438_s2 = scalar_lea.vmem %s1778_s30, 512  ;;  %p1443_p12 = scmp.lt.s32.totalorder %s1778_s30, %s1778_s30 }
  0x29   :  { %p1439_p11 = scmp.ne.s32.totalorder %s1778_s30, %s1438_s2  ;;  %p1444_p13 = scmp.lt.s32.totalorder %s1438_s2, %s1438_s2 }
  0x2b   :  { %p1445_p0 = por %p1444_p13, %p1443_p12 }
  0x2d   :  { %p1446_p1 = pnand %p1445_p0, %p1439_p11 }
  0x2f   :  { %1449 = shalt.err (!%p1446_p1)
}
  0x30   :  { %s1664_s28 = smov 128   ;;  %s1665_s1 = smov 8  }
  0x31   :  { %74 = dma.hbm_to_vmem [thread:$0]  %s2334_s4, 512, %s1778_s30, [#allocation9], %s1664_s28, %s1664_s28, %s1665_s1  }
  0x32   :  { %s1666_s25 = smov [#allocation11]   ;;  %s1667_s27 = smov [#allocation2]  }
  0x33   :  { %s93_s26 = sshll.u32 %s1666_s25, 4  ;;  %s37_s29 = sshll.u32 %s1667_s27, 4  ;;  %s94_s26 = int_to_ptr.vmem [resolvable:$true] %s93_s26  ;;  %s38_s29 = int_to_ptr.vmem [resolvable:$true] %s37_s29 }
  0x34   :  { %s1450_s21 = scalar_lea.hbm %s2337_s7, 16 }
  0x35   :  { %p1451_p2 = scmp.ne.s32.totalorder %s2337_s7, %s1450_s21  ;;  %p1454_p3 = scmp.lt.u32.totalorder %s1450_s21, %s2337_s7 }
  0x37   :  { %p1456_p4 = pnand %p1454_p3, %p1451_p2 }
  0x39   :  { %1459 = shalt.err (!%p1456_p4)
}
  0x3a   :  { %s1460_s4 = scalar_lea.vmem %s94_s26, 16  ;;  %s1464_s30 = scalar_lea.vmem %s94_s26, 32 }
  0x3b   :  { %p1461_p5 = scmp.ne.s32.totalorder %s94_s26, %s1460_s4  ;;  %p1465_p6 = scmp.lt.s32.totalorder %s94_s26, %s94_s26 }
  0x3c   :  { %p1466_p7 = scmp.lt.s32.totalorder %s1464_s30, %s1460_s4 }
  0x3e   :  { %p1467_p8 = por %p1466_p7, %p1465_p6 }
  0x40   :  { %p1468_p9 = pnand %p1467_p8, %p1461_p5 }
  0x42   :  { %1471 = shalt.err (!%p1468_p9)
}
  0x43   :  { %96 = dma.hbm_to_vmem [thread:$0]  %s2337_s7, 16, %s94_s26, [#allocation12]  }
  0x44   :  { %s2357_s25 = sld [smem:[#allocation27_spill]] }
  0x4a   :  { %s1472_s27 = scalar_lea.hbm %s2357_s25, 32 }
  0x4b   :  { %p1473_p10 = scmp.ne.s32.totalorder %s2357_s25, %s1472_s27  ;;  %p1476_p11 = scmp.lt.u32.totalorder %s1472_s27, %s2357_s25 }
  0x4d   :  { %p1478_p12 = pnand %p1476_p11, %p1473_p10 }
  0x4f   :  { %1481 = shalt.err (!%p1478_p12)
}
  0x50   :  { %s1482_s20 = scalar_lea.vmem %s38_s29, 32  ;;  %p1487_p0 = scmp.lt.s32.totalorder %s38_s29, %s38_s29 }
  0x51   :  { %p1483_p13 = scmp.ne.s32.totalorder %s38_s29, %s1482_s20  ;;  %p1488_p1 = scmp.lt.s32.totalorder %s1482_s20, %s1482_s20 }
  0x53   :  { %p1489_p2 = por %p1488_p1, %p1487_p0 }
  0x55   :  { %p1490_p3 = pnand %p1489_p2, %p1483_p13 }
  0x57   :  { %1493 = shalt.err (!%p1490_p3)
}
  0x58   :  { %40 = dma.hbm_to_vmem [thread:$0]  %s2357_s25, 32, %s38_s29, [#allocation3]  }
  0x59   :  { %s1668_s22 = smov [#allocation7]   ;;  %s1669_s4 = smov [#allocation10]  }
  0x5a   :  { %s59_s2 = sshll.u32 %s1668_s22, 4  ;;  %s81_s30 = sshll.u32 %s1669_s4, 4  ;;  %s60_s2 = int_to_ptr.vmem [resolvable:$true] %s59_s2  ;;  %s82_s30 = int_to_ptr.vmem [resolvable:$true] %s81_s30 }
  0x5b   :  { %s1494_s23 = scalar_lea.hbm %s2333_s3, 32 }
  0x5c   :  { %p1495_p4 = scmp.ne.s32.totalorder %s2333_s3, %s1494_s23  ;;  %p1498_p5 = scmp.lt.u32.totalorder %s1494_s23, %s2333_s3 }
  0x5e   :  { %p1500_p6 = pnand %p1498_p5, %p1495_p4 }
  0x60   :  { %1503 = shalt.err (!%p1500_p6)
}
  0x61   :  { %s1504_s29 = scalar_lea.vmem %s60_s2, 32  ;;  %p1509_p8 = scmp.lt.s32.totalorder %s60_s2, %s60_s2 }
  0x62   :  { %p1505_p7 = scmp.ne.s32.totalorder %s60_s2, %s1504_s29  ;;  %p1510_p9 = scmp.lt.s32.totalorder %s1504_s29, %s1504_s29 }
  0x64   :  { %p1511_p10 = por %p1510_p9, %p1509_p8 }
  0x66   :  { %p1512_p11 = pnand %p1511_p10, %p1505_p7 }
  0x68   :  { %1515 = shalt.err (!%p1512_p11)
}
  0x69   :  { %62 = dma.hbm_to_vmem [thread:$0]  %s2333_s3, 32, %s60_s2, [#allocation6]  }
  0x6a   :  { %s1516_s7 = scalar_lea.hbm %s2335_s5, 16 }
  0x6b   :  { %p1517_p12 = scmp.ne.s32.totalorder %s2335_s5, %s1516_s7  ;;  %p1520_p13 = scmp.lt.u32.totalorder %s1516_s7, %s2335_s5 }
  0x6d   :  { %p1522_p0 = pnand %p1520_p13, %p1517_p12 }
  0x6f   :  { %1525 = shalt.err (!%p1522_p0)
}
  0x70   :  { %s1526_s1 = scalar_lea.vmem %s82_s30, 16  ;;  %s1530_s23 = scalar_lea.vmem %s82_s30, 32 }
  0x71   :  { %p1527_p1 = scmp.ne.s32.totalorder %s82_s30, %s1526_s1  ;;  %p1531_p2 = scmp.lt.s32.totalorder %s82_s30, %s82_s30 }
  0x72   :  { %p1532_p3 = scmp.lt.s32.totalorder %s1530_s23, %s1526_s1 }
  0x74   :  { %p1533_p4 = por %p1532_p3, %p1531_p2 }
  0x76   :  { %p1534_p5 = pnand %p1533_p4, %p1527_p1 }
  0x78   :  { %1537 = shalt.err (!%p1534_p5)
}
  0x79   :  { %84 = dma.hbm_to_vmem [thread:$0]  %s2335_s5, 16, %s82_s30, [#allocation9]  }
  0x7a   :  { %s1670_s24 = smov [#allocation13]   ;;  %s1538_s29 = scalar_lea.hbm %s2340_s10, 4096 }
  0x7b   :  { %s106_s27 = sshll.u32 %s1670_s24, 4  ;;  %p1539_p6 = scmp.ne.s32.totalorder %s2340_s10, %s1538_s29  ;;  %s107_s27 = int_to_ptr.vmem [resolvable:$true] %s106_s27 }
  0x7c   :  { %p1542_p7 = scmp.lt.u32.totalorder %s1538_s29, %s2340_s10 }
  0x7e   :  { %p1544_p8 = pnand %p1542_p7, %p1539_p6 }
  0x80   :  { %1547 = shalt.err (!%p1544_p8)
}
  0x81   :  { %s1548_s7 = scalar_lea.vmem %s107_s27, 4096  ;;  %p1553_p10 = scmp.lt.s32.totalorder %s107_s27, %s107_s27 }
  0x82   :  { %p1549_p9 = scmp.ne.s32.totalorder %s107_s27, %s1548_s7  ;;  %p1554_p11 = scmp.lt.s32.totalorder %s1548_s7, %s1548_s7 }
  0x84   :  { %p1555_p12 = por %p1554_p11, %p1553_p10 }
  0x86   :  { %p1556_p13 = pnand %p1555_p12, %p1549_p9 }
  0x88   :  { %1559 = shalt.err (!%p1556_p13)
}
  0x89   :  { %s1671_s5 = smov 256   ;;  %s1672_s30 = smov 16  }
  0x8a   :  { %112 = dma.hbm_to_vmem [thread:$0]  %s2340_s10, 4096, %s107_s27, [#allocation12], %s1671_s5, %s1671_s5, %s1672_s30  }
  0x8b   :  { %1648 = dma.done.wait [#allocation3], 32  }
  0x8c   :  { %1649 = vsyncadd [#allocation3], 4294967264 }
  0x8d   :  { %1650 = dma.done.wait [#allocation6], 64  }
  0x8e   :  { %1651 = vsyncadd [#allocation6], 4294967232 }
  0x8f   :  { %1652 = dma.done.wait [#allocation9], 528  }
  0x90   :  { %1653 = vsyncadd [#allocation9], 4294966768 }
  0x91   :  { %1654 = dma.done.wait [#allocation12], 4112  }
  0x92   :  { %1655 = vsyncadd [#allocation12], 4294963184  ;;  %v1673_v0 = vmov 0.0   ;;  %v1674_v1 = vmov 0.0|0.0   ;;  %vm1675_vm0 = vmmov 0   ;;  %v434_v2 = vld [vmem:[#allocation13 + $0x8] sm:$0xff] }
  0x93   :  { %529 = vmatprep.mubr.f32.mxu0 %v1673_v0  ;;  %1207 = vmatprep.subr.bf16.mxu1 %v1674_v1  ;;  %v436_v3 = vld [vmem:[#allocation13 + $0x18] sm:$0xff]  ;;  %v433_v4 = vld [vmem:[#allocation13] sm:$0xff]  ;;  %v435_v6 = vld [vmem:[#allocation13 + $0x10] sm:$0xff]  ;;  %vm154_vm1 = vcmask 261120   ;;  %s2358_s2 = sld [smem:[#allocation29_spill]]  ;;  %vm244_vm2 = vcmask 523264  }
  0x94   :  { %1145 = vmatprep.mubr.msk.f32.mxu1 %vm1675_vm0, %v1673_v0  ;;  %v1225_v5 = vpack.c.bf16 %v436_v3, %v434_v2  ;;  %v438_v7 = vld [vmem:[#allocation13 + $0x28] sm:$0xff]  ;;  %v440_v8 = vld [vmem:[#allocation13 + $0x38] sm:$0xff]  ;;  %v1227_v9 = vpack.c.bf16 %v435_v6, %v433_v4  ;;  %v437_v11 = vld [vmem:[#allocation13 + $0x20] sm:$0xff]  ;;  %vm319_vm3 = vcmask 254976   ;;  %vm352_vm4 = vcmask 58368   ;;  %s1678_s21 = smov 104  }
  0x95   :  { %v1229_v10 = vpack.c.bf16 %v440_v8, %v438_v7  ;;  %v439_v12 = vld [vmem:[#allocation13 + $0x30] sm:$0xff]  ;;  %v442_v13 = vld [vmem:[#allocation13 + $0x48] sm:$0xff]  ;;  %v444_v14 = vld [vmem:[#allocation13 + $0x58] sm:$0xff]  ;;  %vm842_vm5 = vcmask 64512   ;;  %vm386_vm6 = vcmask 7168   ;;  %vm388_vm7 = vcmask 15360  }
  0x96   :  { %1226 = vmatprep.subr.bf16.mxu0 %v1225_v5  ;;  %v1231_v15 = vpack.c.bf16 %v439_v12, %v437_v11  ;;  %v1233_v16 = vpack.c.bf16 %v444_v14, %v442_v13  ;;  %v441_v17 = vld [vmem:[#allocation13 + $0x40] sm:$0xff]  ;;  %v443_v18 = vld [vmem:[#allocation13 + $0x50] sm:$0xff]  ;;  %v446_v19 = vld [vmem:[#allocation13 + $0x68] sm:$0xff]  ;;  %vm390_vm8 = vcmask 23552   ;;  %vm392_vm9 = vcmask 31744  }
  0x97   :  { %1228 = vmatpush1.bf16.msra.mxu0 %v1227_v9  ;;  %v448_v20 = vld [vmem:[#allocation13 + $0x78] sm:$0xff]  ;;  %v1235_v21 = vpack.c.bf16 %v443_v18, %v441_v17  ;;  %v445_v23 = vld [vmem:[#allocation13 + $0x60] sm:$0xff]  ;;  %v447_v24 = vld [vmem:[#allocation13 + $0x70] sm:$0xff]  ;;  %vm394_vm10 = vcmask 39936   ;;  %vm396_vm11 = vcmask 41984  }
  0x98   :  { %1230 = vmatprep.subr.bf16.mxu0 %v1229_v10  ;;  %v1237_v22 = vpack.c.bf16 %v448_v20, %v446_v19  ;;  %v450_v25 = vld [vmem:[#allocation13 + $0x88] sm:$0xff]  ;;  %v452_v26 = vld [vmem:[#allocation13 + $0x98] sm:$0xff]  ;;  %v1239_v27 = vpack.c.bf16 %v447_v24, %v445_v23  ;;  %v449_v29 = vld [vmem:[#allocation13 + $0x80] sm:$0xff] }
  0x99   :  { %v1241_v28 = vpack.c.bf16 %v452_v26, %v450_v25  ;;  %v451_v30 = vld [vmem:[#allocation13 + $0x90] sm:$0xff]  ;;  %v454_v31 = vld [vmem:[#allocation13 + $0xa8] sm:$0xff]  ;;  %v456_v32 = vld [vmem:[#allocation13 + $0xb8] sm:$0xff] }
  0x9a   :  { %v1243_v33 = vpack.c.bf16 %v451_v30, %v449_v29  ;;  %v1245_v34 = vpack.c.bf16 %v456_v32, %v454_v31  ;;  %v453_v35 = vld [vmem:[#allocation13 + $0xa0] sm:$0xff]  ;;  %v455_v36 = vld [vmem:[#allocation13 + $0xb0] sm:$0xff]  ;;  %v458_v37 = vld [vmem:[#allocation13 + $0xc8] sm:$0xff] }
  0x9b   :  { %1232 = vmatpush1.bf16.msra.mxu0 %v1231_v15  ;;  %v460_v38 = vld [vmem:[#allocation13 + $0xd8] sm:$0xff]  ;;  %v1247_v39 = vpack.c.bf16 %v455_v36, %v453_v35  ;;  %v457_v42 = vld [vmem:[#allocation13 + $0xc0] sm:$0xff]  ;;  %v459_v43 = vld [vmem:[#allocation13 + $0xd0] sm:$0xff] }
  0x9c   :  { %1234 = vmatprep.subr.bf16.mxu0 %v1233_v16  ;;  %v143_v40 = vld [vmem:[#allocation8] sm:$0xff]  ;;  %v1249_v41 = vpack.c.bf16 %v460_v38, %v458_v37  ;;  %v144_v44 = vld [vmem:[#allocation8 + $0x8] sm:$0xff]  ;;  %v145_v48 = vld [vmem:[#allocation8 + $0x10] sm:$0xff]  ;;  %v1251_v50 = vpack.c.bf16 %v459_v43, %v457_v42 }
  0x9d   :  { %v462_v45 = vld [vmem:[#allocation13 + $0xe8] sm:$0xff]  ;;  %v464_v46 = vld [vmem:[#allocation13 + $0xf8] sm:$0xff]  ;;  %v1208_v47 = vpack.c.bf16 %v144_v44, %v143_v40  ;;  %v461_v53 = vld [vmem:[#allocation13 + $0xe0] sm:$0xff] }
  0x9e   :  { %v146_v49 = vld [vmem:[#allocation8 + $0x18] sm:$0xff]  ;;  %v1253_v52 = vpack.c.bf16 %v464_v46, %v462_v45  ;;  %v402_v55 = vld [vmem:[%s2339_s9 + $0x8] sm:$0xff]  ;;  %v403_v63 = vld [vmem:[%s2339_s9 + $0x10] sm:$0xff] }
  0x9f   :  { %1236 = vmatpush1.bf16.msra.mxu0 %v1235_v21  ;;  %1209 = vmatpush3.bf16.msra.mxu1 %v1208_v47  ;;  %v1211_v51 = vpack.c.bf16 %v146_v49, %v145_v48  ;;  %v463_v54 = vld [vmem:[#allocation13 + $0xf0] sm:$0xff]  ;;  %v1885_v59 = vld [vmem:[#allocation7] sm:$0x3]  ;;  %v406_v2 = vld [vmem:[%s2339_s9 + $0x28] sm:$0xff] }
  0xa0   :  { %1238 = vmatprep.subr.bf16.mxu0 %v1237_v22  ;;  %1210 = vmatprep.subr.bf16.mxu1 %v1674_v1  ;;  %v404_v56 = vld [vmem:[%s2339_s9 + $0x18] sm:$0xff]  ;;  %v1255_v57 = vpack.c.bf16 %v463_v54, %v461_v53  ;;  %v1883_v58 = vld [vmem:[%s2358_s2] sm:$0x3]  ;;  %v407_v8 = vld [vmem:[%s2339_s9 + $0x30] sm:$0xff] }
  0xa1   :  { %v142_v60 = vld [vmem:[#allocation2] sm:$0x3]  ;;  %v1257_v61 = vpack.c.bf16 %v404_v56, %v402_v55  ;;  %v408_v3 = vld [vmem:[%s2339_s9 + $0x38] sm:$0xff]  ;;  %v400_v4 = vmul.f32 %v1885_v59, %v1883_v58  ;;  %v410_v9 = vld [vmem:[%s2339_s9 + $0x48] sm:$0xff] }
  0xa2   :  { %v401_v62 = vld [vmem:[%s2339_s9] sm:$0xff]  ;;  %v1261_v6 = vpack.c.bf16 %v408_v3, %v406_v2  ;;  %v412_v10 = vld [vmem:[%s2339_s9 + $0x58] sm:$0xff]  ;;  %v230_v12 = vld [vmem:[%s2336_s6 + $0x8] sm:$0xff] }
  0xa3   :  { %1240 = vmatpush1.bf16.msra.mxu0 %v1239_v27  ;;  %1212 = vmatpush3.bf16.msra.mxu1 %v1211_v51  ;;  %v1259_v5 = vpack.c.bf16 %v403_v63, %v401_v62  ;;  %v405_v7 = vld [vmem:[%s2339_s9 + $0x20] sm:$0xff]  ;;  %v231_v14 = vld [vmem:[%s2336_s6 + $0x10] sm:$0xff]  ;;  %v232_v15 = vld [vmem:[%s2336_s6 + $0x18] sm:$0xff]  ;;  %v1265_v17 = vpack.c.bf16 %v412_v10, %v410_v9 }
  0xa4   :  { %1242 = vmatprep.subr.bf16.mxu0 %v1241_v28  ;;  %1213 = vmatprep.subr.bf16.mxu1 %v1674_v1  ;;  %v229_v11 = vld [vmem:[%s2336_s6] sm:$0xff]  ;;  %v1263_v16 = vpack.c.bf16 %v407_v8, %v405_v7  ;;  %v411_v19 = vld [vmem:[%s2339_s9 + $0x50] sm:$0xff]  ;;  %v414_v20 = vld [vmem:[%s2339_s9 + $0x68] sm:$0xff]  ;;  %v1217_v21 = vpack.c.bf16 %v232_v15, %v231_v14 }
  0xa5   :  { %v1214_v13 = vpack.c.bf16 %v230_v12, %v229_v11  ;;  %v409_v18 = vld [vmem:[%s2339_s9 + $0x40] sm:$0xff]  ;;  %v416_v22 = vld [vmem:[%s2339_s9 + $0x78] sm:$0xff]  ;;  %v234_v24 = vld [vmem:[%s2336_s6 + $0x28] sm:$0xff] }
  0xa6   :  { %1146 = vmatmul.mubr.msk.f32.vlgmr.msra.gmra.mrb[0].mxu1 %vm154_vm1, %v142_v60  ;;  %v233_v23 = vld [vmem:[%s2336_s6 + $0x20] sm:$0xff]  ;;  %v1267_v25 = vpack.c.bf16 %v411_v19, %v409_v18  ;;  %v1269_v26 = vpack.c.bf16 %v416_v22, %v414_v20  ;;  %v415_v28 = vld [vmem:[%s2339_s9 + $0x70] sm:$0xff]  ;;  %v418_v30 = vld [vmem:[%s2339_s9 + $0x88] sm:$0xff] }
  0xa7   :  { %1244 = vmatpush1.bf16.msra.mxu0 %v1243_v33  ;;  %1164 = vmatprep.mubr.msk.f32.mxu1 %vm1675_vm0, %v1673_v0  ;;  %v413_v27 = vld [vmem:[%s2339_s9 + $0x60] sm:$0xff]  ;;  %v1220_v29 = vpack.c.bf16 %v234_v24, %v233_v23  ;;  %v420_v31 = vld [vmem:[%s2339_s9 + $0x98] sm:$0xff]  ;;  %v419_v35 = vld [vmem:[%s2339_s9 + $0x90] sm:$0xff] }
  0xa8   :  { %1246 = vmatprep.subr.bf16.mxu0 %v1245_v34  ;;  %1215 = vmatpush3.bf16.msra.mxu1 %v1214_v13  ;;  %v1271_v32 = vpack.c.bf16 %v415_v28, %v413_v27  ;;  %v1273_v33 = vpack.c.bf16 %v420_v31, %v418_v30  ;;  %v417_v34 = vld [vmem:[%s2339_s9 + $0x80] sm:$0xff]  ;;  %v422_v36 = vld [vmem:[%s2339_s9 + $0xa8] sm:$0xff]  ;;  %v424_v37 = vld [vmem:[%s2339_s9 + $0xb8] sm:$0xff] }
  0xa9   :  { %1216 = vmatprep.subr.bf16.mxu1 %v1674_v1  ;;  %v1275_v38 = vpack.c.bf16 %v419_v35, %v417_v34  ;;  %v421_v40 = vld [vmem:[%s2339_s9 + $0xa0] sm:$0xff]  ;;  %v426_v42 = vld [vmem:[%s2339_s9 + $0xc8] sm:$0xff]  ;;  %v428_v43 = vld [vmem:[%s2339_s9 + $0xd8] sm:$0xff] }
  0xaa   :  { %v1281_v45 = vpack.c.bf16 %v428_v43, %v426_v42  ;;  %v425_v46 = vld [vmem:[%s2339_s9 + $0xc0] sm:$0xff]  ;;  %v427_v47 = vld [vmem:[%s2339_s9 + $0xd0] sm:$0xff]  ;;  %v430_v48 = vld [vmem:[%s2339_s9 + $0xe8] sm:$0xff] }
  0xab   :  { %1248 = vmatpush1.bf16.msra.mxu0 %v1247_v39  ;;  %v1277_v39 = vpack.c.bf16 %v424_v37, %v422_v36  ;;  %v432_v49 = vld [vmem:[%s2339_s9 + $0xf8] sm:$0xff]  ;;  %v431_v53 = vld [vmem:[%s2339_s9 + $0xf0] sm:$0xff]  ;;  %v608_v54 = vld [vmem:[%s2338_s8 + $0x8] sm:$0xff] }
  0xac   :  { %1250 = vmatprep.subr.bf16.mxu0 %v1249_v41  ;;  %1218 = vmatpush3.bf16.msra.mxu1 %v1217_v21  ;;  %v423_v41 = vld [vmem:[%s2339_s9 + $0xb0] sm:$0xff]  ;;  %v1285_v51 = vpack.c.bf16 %v432_v49, %v430_v48  ;;  %v610_v55 = vld [vmem:[%s2338_s8 + $0x18] sm:$0xff]  ;;  %v607_v60 = vld [vmem:[%s2338_s8] sm:$0xff] }
  0xad   :  { %1219 = vmatprep.subr.bf16.mxu1 %v1674_v1  ;;  %v1279_v44 = vpack.c.bf16 %v423_v41, %v421_v40  ;;  %v612_v62 = vld [vmem:[%s2338_s8 + $0x28] sm:$0xff]  ;;  %v614_v63 = vld [vmem:[%s2338_s8 + $0x38] sm:$0xff]  ;;  %v615_v10 = vld [vmem:[%s2338_s8 + $0x40] sm:$0xff] }
  0xae   :  { %v1293_v3 = vpack.c.bf16 %v614_v63, %v612_v62  ;;  %v618_v7 = vld [vmem:[%s2338_s8 + $0x58] sm:$0xff]  ;;  %v617_v11 = vld [vmem:[%s2338_s8 + $0x50] sm:$0xff]  ;;  %v620_v12 = vld [vmem:[%s2338_s8 + $0x68] sm:$0xff] }
  0xaf   :  { %1252 = vmatpush1.bf16.msra.mxu0 %v1251_v50  ;;  %v1283_v50 = vpack.c.bf16 %v427_v47, %v425_v46  ;;  %v622_v13 = vld [vmem:[%s2338_s8 + $0x78] sm:$0xff]  ;;  %v1299_v14 = vpack.c.bf16 %v617_v11, %v615_v10  ;;  %v624_v18 = vld [vmem:[%s2338_s8 + $0x88] sm:$0xff]  ;;  %v623_v22 = vld [vmem:[%s2338_s8 + $0x80] sm:$0xff] }
  0xb0   :  { %1254 = vmatprep.subr.bf16.mxu0 %v1253_v52  ;;  %1221 = vmatpush3.bf16.msra.mxu1 %v1220_v29  ;;  %v429_v52 = vld [vmem:[%s2339_s9 + $0xe0] sm:$0xff]  ;;  %v1301_v15 = vpack.c.bf16 %v622_v13, %v620_v12  ;;  %v626_v19 = vld [vmem:[%s2338_s8 + $0x98] sm:$0xff]  ;;  %v625_v23 = vld [vmem:[%s2338_s8 + $0x90] sm:$0xff] }
  0xb1   :  { %1222 = vmatprep.subr.bf16.mxu1 %v1674_v1  ;;  %v1287_v56 = vpack.c.bf16 %v431_v53, %v429_v52  ;;  %v1305_v21 = vpack.c.bf16 %v626_v19, %v624_v18  ;;  %v628_v24 = vld [vmem:[%s2338_s8 + $0xa8] sm:$0xff]  ;;  %v627_v28 = vld [vmem:[%s2338_s8 + $0xa0] sm:$0xff]  ;;  %v629_v29 = vld [vmem:[%s2338_s8 + $0xb0] sm:$0xff] }
  0xb2   :  { %v632_v30 = vld [vmem:[%s2338_s8 + $0xc8] sm:$0xff]  ;;  %v634_v31 = vld [vmem:[%s2338_s8 + $0xd8] sm:$0xff]  ;;  %v631_v34 = vld [vmem:[%s2338_s8 + $0xc0] sm:$0xff] }
  0xb3   :  { %1256 = vmatpush1.bf16.msra.mxu0 %v1255_v57  ;;  %v1289_v57 = vpack.c.bf16 %v610_v55, %v608_v54  ;;  %v633_v35 = vld [vmem:[%s2338_s8 + $0xd0] sm:$0xff]  ;;  %v636_v36 = vld [vmem:[%s2338_s8 + $0xe8] sm:$0xff]  ;;  %v638_v37 = vld [vmem:[%s2338_s8 + $0xf8] sm:$0xff] }
  0xb4   :  { %1258 = vmatprep.subr.bf16.mxu0 %v1257_v61  ;;  %v609_v61 = vld [vmem:[%s2338_s8 + $0x10] sm:$0xff]  ;;  %v635_v40 = vld [vmem:[%s2338_s8 + $0xe0] sm:$0xff]  ;;  %v745_v47 = vld [vmem:[%s2342_s12 + $0x88] sm:$0xff] }
  0xb5   :  { %v1291_v2 = vpack.c.bf16 %v609_v61, %v607_v60  ;;  %v637_v41 = vld [vmem:[%s2338_s8 + $0xf0] sm:$0xff]  ;;  %v744_v46 = vld [vmem:[%s2342_s12 + $0x80] sm:$0xff]  ;;  %v747_v53 = vld [vmem:[%s2342_s12 + $0x98] sm:$0xff] }
  0xb6   :  { %530 = vmatmul.mubr.f32.vlgmr.msra.gmra.mrb[0].mxu0 %v400_v4  ;;  %v611_v4 = vld [vmem:[%s2338_s8 + $0x20] sm:$0xff]  ;;  %v1319_v42 = vpack.c.bf16 %v637_v41, %v635_v40  ;;  %v235_v43 = vld [vmem:[%s2336_s6 + $0x30] sm:$0xff]  ;;  %v1321_v48 = vpack.c.bf16 %v745_v47, %v744_v46  ;;  %v731_v62 = vld [vmem:[%s2342_s12 + $0x18] sm:$0xff] }
  0xb7   :  { %1260 = vmatpush1.bf16.msra.mxu0 %v1259_v5  ;;  %600 = vmatprep.mubr.f32.mxu0 %v1673_v0  ;;  %v613_v5 = vld [vmem:[%s2338_s8 + $0x30] sm:$0xff]  ;;  %v728_v49 = vld [vmem:[%s2342_s12] sm:$0xff]  ;;  %v735_v12 = vld [vmem:[%s2342_s12 + $0x38] sm:$0xff] }
  0xb8   :  { %1262 = vmatprep.subr.bf16.mxu0 %v1261_v6  ;;  %v616_v6 = vld [vmem:[%s2338_s8 + $0x48] sm:$0xff]  ;;  %v1295_v8 = vpack.c.bf16 %v613_v5, %v611_v4  ;;  %v746_v52 = vld [vmem:[%s2342_s12 + $0x90] sm:$0xff]  ;;  %v748_v63 = vld [vmem:[%s2342_s12 + $0xa0] sm:$0xff] }
  0xb9   :  { %v1297_v9 = vpack.c.bf16 %v618_v7, %v616_v6  ;;  %v1325_v60 = vpack.c.bf16 %v747_v53, %v746_v52  ;;  %v730_v61 = vld [vmem:[%s2342_s12 + $0x10] sm:$0xff]  ;;  %v732_v5 = vld [vmem:[%s2342_s12 + $0x20] sm:$0xff]  ;;  %v733_v6 = vld [vmem:[%s2342_s12 + $0x28] sm:$0xff] }
  0xba   :  { %v750_v7 = vld [vmem:[%s2342_s12 + $0xb0] sm:$0xff]  ;;  %v752_v13 = vld [vmem:[%s2342_s12 + $0xc0] sm:$0xff]  ;;  %v737_v18 = vld [vmem:[%s2342_s12 + $0x48] sm:$0xff] }
  0xbb   :  { %1264 = vmatpush1.bf16.msra.mxu0 %v1263_v16  ;;  %v619_v16 = vld [vmem:[%s2338_s8 + $0x60] sm:$0xff]  ;;  %v734_v11 = vld [vmem:[%s2342_s12 + $0x30] sm:$0xff] }
  0xbc   :  { %1266 = vmatprep.subr.bf16.mxu0 %v1265_v17  ;;  %v621_v17 = vld [vmem:[%s2338_s8 + $0x70] sm:$0xff]  ;;  %v712_v41 = vld [vmem:[%s2341_s11] sm:$0x3]  ;;  %s1676_s11 = smov 120  }
  0xbd   :  { %v1303_v20 = vpack.c.bf16 %v621_v17, %v619_v16  ;;  %v736_v17 = vld [vmem:[%s2342_s12 + $0x40] sm:$0xff]  ;;  %v754_v19 = vld [vmem:[%s2342_s12 + $0xd0] sm:$0xff] }
  0xbf   :  { %1268 = vmatpush1.bf16.msra.mxu0 %v1267_v25  ;;  %v630_v25 = vld [vmem:[%s2338_s8 + $0xb8] sm:$0xff]  ;;  %s1680_s8 = smov [#allocation14]  }
  0xc0   :  { %1270 = vmatprep.subr.bf16.mxu0 %v1269_v26  ;;  %v1307_v26 = vpack.c.bf16 %v625_v23, %v623_v22  ;;  %v1309_v27 = vpack.c.bf16 %v630_v25, %v628_v24  ;;  %v738_v23 = vld [vmem:[%s2342_s12 + $0x50] sm:$0xff]  ;;  %v739_v24 = vld [vmem:[%s2342_s12 + $0x58] sm:$0xff]  ;;  %v756_v25 = vld [vmem:[%s2342_s12 + $0xe0] sm:$0xff]  ;;  %s1011_s22 = sshll.u32 %s1680_s8, 4  ;;  %s1012_s22 = int_to_ptr.vmem [resolvable:$true] %s1011_s22 }
  0xc3   :  { %1272 = vmatpush1.bf16.msra.mxu0 %v1271_v32  ;;  %v1311_v32 = vpack.c.bf16 %v629_v29, %v627_v28  ;;  %v740_v29 = vld [vmem:[%s2342_s12 + $0x60] sm:$0xff] }
  0xc4   :  { %1274 = vmatprep.subr.bf16.mxu0 %v1273_v33  ;;  %v1313_v33 = vpack.c.bf16 %v634_v31, %v632_v30  ;;  %v741_v30 = vld [vmem:[%s2342_s12 + $0x68] sm:$0xff]  ;;  %v758_v31 = vld [vmem:[%s2342_s12 + $0xf0] sm:$0xff] }
  0xc7   :  { %1276 = vmatpush1.bf16.msra.mxu0 %v1275_v38  ;;  %v1315_v38 = vpack.c.bf16 %v633_v35, %v631_v34  ;;  %v742_v35 = vld [vmem:[%s2342_s12 + $0x70] sm:$0xff] }
  0xc8   :  { %1278 = vmatprep.subr.bf16.mxu0 %v1277_v39  ;;  %v1317_v39 = vpack.c.bf16 %v638_v37, %v636_v36  ;;  %v743_v36 = vld [vmem:[%s2342_s12 + $0x78] sm:$0xff] }
  0xc9   :  { %v1351_v37 = vpack.c.bf16 %v743_v36, %v742_v35  ;;  %v921_v35 = vld [vmem:[%s2344_s14 + $0x20] sm:$0xff]  ;;  %v922_v36 = vld [vmem:[%s2344_s14 + $0x28] sm:$0xff] }
  0xcb   :  { %1280 = vmatpush1.bf16.msra.mxu0 %v1279_v44  ;;  %v236_v44 = vld [vmem:[%s2336_s6 + $0x38] sm:$0xff] }
  0xcc   :  { %1282 = vmatprep.subr.bf16.mxu0 %v1281_v45  ;;  %v1223_v45 = vpack.c.bf16 %v236_v44, %v235_v43 }
  0xce   :  { %1224 = vmatpush3.bf16.msra.mxu1 %v1223_v45 }
  0xcf   :  { %1284 = vmatpush1.bf16.msra.mxu0 %v1283_v50  ;;  %1322 = vmatprep.subr.bf16.mxu1 %v1321_v48  ;;  %v729_v50 = vld [vmem:[%s2342_s12 + $0x8] sm:$0xff] }
  0xd0   :  { %1286 = vmatprep.subr.bf16.mxu0 %v1285_v51 }
  0xd3   :  { %1288 = vmatpush1.bf16.msra.mxu0 %v1287_v56  ;;  %v1323_v56 = vpack.c.bf16 %v729_v50, %v728_v49  ;;  %v1066_v50 = vld [vmem:[#allocation11] ss:$0 sm:$0xff] }
  0xd4   :  { %1290 = vmatprep.subr.bf16.mxu0 %v1289_v57 }
  0xd6   :  { %601 = vmatmul.mubr.f32.vlgmr.msra.gmra.mrb[0].mxu0 %v1883_v58 }
  0xd7   :  { %1292 = vmatpush1.bf16.msra.mxu0 %v1291_v2  ;;  %703 = vmatprep.mubr.f32.mxu0 %v1673_v0  ;;  %v749_v2 = vld [vmem:[%s2342_s12 + $0xa8] sm:$0xff] }
  0xd8   :  { %1294 = vmatprep.subr.bf16.mxu0 %v1293_v3  ;;  %v1327_v3 = vpack.c.bf16 %v731_v62, %v730_v61  ;;  %v1329_v4 = vpack.c.bf16 %v749_v2, %v748_v63  ;;  %v321_v61 = vld [vmem:[#allocation5] sm:$0x3] }
  0xd9   :  { %324 = vrot.lane.b32.xlu1 %v321_v61, %s1676_s11 }
  0xdb   :  { %1296 = vmatpush1.bf16.msra.mxu0 %v1295_v8  ;;  %v751_v8 = vld [vmem:[%s2342_s12 + $0xb8] sm:$0xff] }
  0xdc   :  { %1298 = vmatprep.subr.bf16.mxu0 %v1297_v9  ;;  %v1331_v9 = vpack.c.bf16 %v733_v6, %v732_v5  ;;  %v1333_v10 = vpack.c.bf16 %v751_v8, %v750_v7  ;;  %v841_v5 = vld [vmem:[%s2343_s13] sm:$0xff] }
  0xdf   :  { %1300 = vmatpush1.bf16.msra.mxu0 %v1299_v14  ;;  %v753_v14 = vld [vmem:[%s2342_s12 + $0xc8] sm:$0xff] }
  0xe0   :  { %1302 = vmatprep.subr.bf16.mxu0 %v1301_v15  ;;  %v1335_v15 = vpack.c.bf16 %v735_v12, %v734_v11  ;;  %v1337_v16 = vpack.c.bf16 %v753_v14, %v752_v13 }
  0xe3   :  { %1304 = vmatpush1.bf16.msra.mxu0 %v1303_v20  ;;  %v755_v20 = vld [vmem:[%s2342_s12 + $0xd8] sm:$0xff] }
  0xe4   :  { %1306 = vmatprep.subr.bf16.mxu0 %v1305_v21  ;;  %v1339_v21 = vpack.c.bf16 %v737_v18, %v736_v17  ;;  %v1341_v22 = vpack.c.bf16 %v755_v20, %v754_v19  ;;  %v917_v20 = vld [vmem:[%s2344_s14] sm:$0xff] }
  0xe7   :  { %1308 = vmatpush1.bf16.msra.mxu0 %v1307_v26  ;;  %v757_v26 = vld [vmem:[%s2342_s12 + $0xe8] sm:$0xff] }
  0xe8   :  { %1310 = vmatprep.subr.bf16.mxu0 %v1309_v27  ;;  %v1343_v27 = vpack.c.bf16 %v739_v24, %v738_v23  ;;  %v1345_v28 = vpack.c.bf16 %v757_v26, %v756_v25 }
  0xeb   :  { %1312 = vmatpush1.bf16.msra.mxu0 %v1311_v32  ;;  %v759_v32 = vld [vmem:[%s2342_s12 + $0xf8] sm:$0xff]  ;;  %s1677_s12 = smov 112  }
  0xec   :  { %1314 = vmatprep.subr.bf16.mxu0 %v1313_v33  ;;  %v1347_v33 = vpack.c.bf16 %v741_v30, %v740_v29  ;;  %v1349_v34 = vpack.c.bf16 %v759_v32, %v758_v31  ;;  %333 = vrot.lane.b32.xlu1 %v321_v61, %s1677_s12  ;;  %v920_v29 = vld [vmem:[%s2344_s14 + $0x18] sm:$0xff] }
  0xef   :  { %1316 = vmatpush1.bf16.msra.mxu0 %v1315_v38  ;;  %v714_v38 = vlaneseq }
  0xf0   :  { %1318 = vmatprep.subr.bf16.mxu0 %v1317_v39 }
  0xf1   :  { %v715_v39 = vshrl.u32 %v714_v38, 7 }
  0xf3   :  { %1320 = vmatpush1.bf16.msra.mxu0 %v1319_v42  ;;  %v716_v40 = vsub.s32 0, %v715_v39  ;;  %v720_v42 = vsub.s32 1, %v715_v39  ;;  %v1360_v39 = vpack.c.bf16 %v922_v36, %v921_v35 }
  0xf5   :  { %v717_v43 = vrot.slane %v712_v41, %v716_v40  ;;  %v721_v44 = vrot.slane %v712_v41, %v720_v42  ;;  %v924_v41 = vld [vmem:[%s2344_s14 + $0x38] sm:$0xff] }
  0xf6   :  { %704 = vmatmul.mubr.f32.vlgmr.msra.gmra.mrb[0].mxu0 %v1885_v59  ;;  %v1064_v59 = vld [vmem:[#allocation10] ss:$0 sm:$0xff] }
 0x14b   :  { %v325_v6 = vpop.permute.xlu1 %324 }
 0x14c   :  { %v354_v7 = vmul.f32 %v325_v6, %v321_v61  ;;  %v327_v23 = vadd.f32 %v325_v6, %v321_v61 }
 0x14e   :  { %367 = vrot.lane.b32.xlu1 %v354_v7, %s1676_s11  ;;  %v355_v11 = vsel %vm352_vm4, %v354_v7, 0.0 }
 0x15e   :  { %v334_v8 = vpop.permute.xlu1 %333 }
 0x15f   :  { %v336_v31 = vadd.f32 %v334_v8, %v327_v23 }
 0x179   :  { %v224_v51 = vpop.f32.mrb[0].mxu1 }
 0x17a   :  { %v225_v54 = vadd.f32 %v1064_v59, %v224_v51  ;;  %v1147_v55 = vpop.f32.mrb[1].mxu1 }
 0x17c   :  { %v228_v57 = vmax.f32 %v225_v54, 0.0 }
 0x17e   :  { %1165 = vmatmul.mubr.msk.f32.vlgmr.msra.gmra.mrb[2].mxu1 %vm244_vm2, %v228_v57 }
 0x17f   :  { %1324 = vmatpush3.bf16.msra.mxu1 %v1323_v56 }
 0x180   :  { %1326 = vmatprep.subr.bf16.mxu1 %v1325_v60 }
 0x183   :  { %1328 = vmatpush3.bf16.msra.mxu1 %v1327_v3 }
 0x184   :  { %1330 = vmatprep.subr.bf16.mxu1 %v1329_v4 }
 0x187   :  { %1332 = vmatpush3.bf16.msra.mxu1 %v1331_v9  ;;  %v358_v9 = vmul.f32 %v334_v8, %v321_v61 }
 0x188   :  { %1334 = vmatprep.subr.bf16.mxu1 %v1333_v10  ;;  %v322_v10 = vmul.f32 %v321_v61, %v321_v61 }
 0x189   :  { %374 = vrot.lane.b32.xlu1 %v358_v9, %s1676_s11  ;;  %v359_v12 = vsel %vm352_vm4, %v358_v9, 0.0 }
 0x18b   :  { %1336 = vmatpush3.bf16.msra.mxu1 %v1335_v15 }
 0x18c   :  { %1338 = vmatprep.subr.bf16.mxu1 %v1337_v16 }
 0x18d   :  { %380 = vrot.lane.b32.xlu1 %v354_v7, %s1677_s12 }
 0x18f   :  { %1340 = vmatpush3.bf16.msra.mxu1 %v1339_v21  ;;  %v918_v21 = vld [vmem:[%s2344_s14 + $0x8] sm:$0xff] }
 0x190   :  { %1342 = vmatprep.subr.bf16.mxu1 %v1341_v22  ;;  %v1354_v26 = vpack.c.bf16 %v918_v21, %v917_v20 }
 0x191   :  { %329 = vrot.lane.b32.xlu1 %v322_v10, %s1676_s11 }
 0x193   :  { %1344 = vmatpush3.bf16.msra.mxu1 %v1343_v27 }
 0x194   :  { %1346 = vmatprep.subr.bf16.mxu1 %v1345_v28  ;;  %v919_v28 = vld [vmem:[%s2344_s14 + $0x10] sm:$0xff] }
 0x195   :  { %337 = vrot.lane.b32.xlu1 %v322_v10, %s1677_s12 }
 0x197   :  { %1348 = vmatpush3.bf16.msra.mxu1 %v1347_v33  ;;  %v1357_v33 = vpack.c.bf16 %v920_v29, %v919_v28 }
 0x198   :  { %1350 = vmatprep.subr.bf16.mxu1 %v1349_v34 }
 0x199   :  { %345 = vrot.lane.b32.xlu1 %v322_v10, %s1678_s21 }
 0x19b   :  { %1352 = vmatpush3.bf16.msra.mxu1 %v1351_v37 }
 0x19c   :  { %1167 = vmatprep.subr.mxu1 %v1673_v0 }
 0x1bd   :  { %360 = vadd.xlane.f32.xlu1 %v359_v12 }
 0x1c0   :  { %v368_v14 = vpop.permute.xlu1 %367 }
 0x1c1   :  { %v370_v22 = vsel %vm352_vm4, %v368_v14, 0.0 }
 0x1c9   :  { %v705_v45 = vpop.f32.mrb[0].mxu0 }
 0x1ca   :  { %v724_v46 = vadd.f32 %v717_v43, %v705_v45  ;;  %v707_v47 = vpop.f32.mrb[1].mxu0 }
 0x1cb   :  { %v725_v48 = vadd.f32 %v721_v44, %v707_v47  ;;  %v926_v47 = vld [vmem:[%s2344_s14 + $0x48] sm:$0xff] }
 0x1cc   :  { %v726_v49 = vmax.f32 %v724_v46, 0.0  ;;  %v925_v46 = vld [vmem:[%s2344_s14 + $0x40] sm:$0xff] }
 0x1cd   :  { %v727_v59 = vmax.f32 %v725_v48, 0.0 }
 0x1cf   :  { %824 = vmatprep.mubr.f32.mxu1 %v727_v59  ;;  %v1366_v59 = vpack.c.bf16 %v926_v47, %v925_v46 }
 0x1d0   :  { %825 = vmatmul.mubr.f32.vlgmr.msra.gmra.mrb[4].mxu1 %v726_v49 }
 0x1d1   :  { %1169 = vmatprep.mubr.msk.f32.mxu1 %vm1675_vm0, %v1673_v0  ;;  %1168 = vmatpush3.msra.mxu1 %v841_v5 }
 0x1d2   :  { %1353 = vmatprep.subr.bf16.mxu1 %v1674_v1 }
 0x1fb   :  { %v375_v17 = vpop.permute.xlu1 %374 }
 0x1fc   :  { %v377_v19 = vsel %vm352_vm4, %v375_v17, 0.0 }
 0x1fd   :  { %378 = vadd.xlane.f32.xlu1 %v377_v19 }
 0x1ff   :  { %v381_v25 = vpop.permute.xlu1 %380 }
 0x200   :  { %v383_v30 = vsel %vm352_vm4, %v381_v25, 0.0 }
 0x203   :  { %v330_v32 = vpop.permute.xlu1 %329 }
 0x204   :  { %v332_v34 = vadd.f32 %v330_v32, %v322_v10 }
 0x207   :  { %v338_v38 = vpop.permute.xlu1 %337 }
 0x208   :  { %v340_v40 = vadd.f32 %v338_v38, %v332_v34 }
 0x20b   :  { %v346_v43 = vpop.permute.xlu1 %345 }
 0x20c   :  { %v348_v45 = vadd.f32 %v346_v43, %v340_v40 }
 0x251   :  { %v314_v51 = vpop.f32.mrb[2].mxu1 }
 0x252   :  { %v315_v52 = vadd.f32 %v1066_v50, %v314_v51  ;;  %v1166_v53 = vpop.f32.mrb[3].mxu1  ;;  %v927_v50 = vld [vmem:[%s2344_s14 + $0x50] sm:$0xff]  ;;  %v928_v51 = vld [vmem:[%s2344_s14 + $0x58] sm:$0xff] }
 0x253   :  { %v929_v53 = vld [vmem:[%s2344_s14 + $0x60] sm:$0xff] }
 0x254   :  { %v318_v54 = vmax.f32 %v315_v52, 0.0  ;;  %v1369_v52 = vpack.c.bf16 %v928_v51, %v927_v50 }
 0x256   :  { %320 = vst.msk [vmem:[#allocation14] sm:$0x3] %vm319_vm3, %v318_v54  ;;  %v930_v54 = vld [vmem:[%s2344_s14 + $0x68] sm:$0xff] }
 0x2a3   :  { %v1115_v55 = vpop.f32.mrb[4].mxu1 }
 0x2a4   :  { %v1116_v56 = vpop.f32.mrb[5].mxu1 }
 0x2a5   :  { %v1117_v57 = vadd.f32 %v1116_v56, %v1115_v55  ;;  %v1372_v55 = vpack.c.bf16 %v930_v54, %v929_v53  ;;  %v931_v56 = vld [vmem:[%s2344_s14 + $0x70] sm:$0xff] }
 0x2a7   :  { %v830_v60 = vsel %vm352_vm4, %v1117_v57, -inf }
 0x2a8   :  { %831 = vmax.xlane.f32.xlu0 %v830_v60 }
 0x335   :  { %v832_v62 = vpop.xlane.xlu0 %831 }
 0x336   :  { %v833_v63 = vsub.f32 %v1117_v57, %v832_v62  ;;  %v932_v57 = vld [vmem:[%s2344_s14 + $0x78] sm:$0xff] }
 0x337   :  { %v1375_v60 = vpack.c.bf16 %v932_v57, %v931_v56 }
 0x338   :  { %v834_v2 = vmul.f32 1.442695, %v833_v63  ;;  %v361_v63 = vpop.xlane.xlu1 %360 }
 0x33a   :  { %1402 = vpow2.f32 %v834_v2 }
 0x33c   :  { %v379_v5 = vpop.xlane.xlu1 %378 }
 0x344   :  { %v1403_v3 = vpop.eup %1402 }
 0x345   :  { %v836_v4 = vsel %vm352_vm4, %v1403_v3, 0.0 }
 0x346   :  { %837 = vadd.xlane.f32.xlu0 %v836_v4 }
 0x35c   :  { %341 = vrot.lane.b32.xlu0 %v321_v61, %s1678_s21 }
 0x37b   :  { %356 = vadd.xlane.f32.xlu0 %v355_v11 }
 0x3d3   :  { %v838_v13 = vpop.xlane.xlu0 %837 }
 0x3d4   :  { %1404 = vrcp.f32 %v838_v13 }
 0x3d7   :  { %v342_v15 = vpop.permute.xlu0 %341 }
 0x3d8   :  { %v362_v16 = vmul.f32 %v342_v15, %v321_v61  ;;  %v344_v37 = vadd.f32 %v342_v15, %v336_v31 }
 0x3da   :  { %v363_v18 = vsel %vm352_vm4, %v362_v16, 0.0  ;;  %v349_v42 = vmul.f32 %v344_v37, %v344_v37 }
 0x3db   :  { %364 = vadd.xlane.f32.xlu0 %v363_v18 }
 0x3dc   :  { %v350_v48 = vsub.f32 %v349_v42, %v348_v45 }
 0x3de   :  { %v1405_v24 = vpop.eup %1404  ;;  %v351_v49 = vmul.f32 0.5, %v350_v48 }
 0x3df   :  { %v840_v27 = vmul.f32 %v1405_v24, %v1403_v3  ;;  %371 = vadd.xlane.f32.xlu0 %v370_v22 }
 0x3e0   :  { %353 = vst.msk [vmem:[#allocation15] sm:$0x3] %vm352_vm4, %v351_v49 }
 0x3e1   :  { %1170 = vmatmul.mubr.msk.f32.vlgmr.msra.gmra.mrb[6].mxu1 %vm842_vm5, %v840_v27 }
 0x3e2   :  { %1355 = vmatpush3.bf16.msra.mxu1 %v1354_v26  ;;  %1204 = vmatprep.mubr.msk.f32.mxu1 %vm1675_vm0, %v1673_v0  ;;  %v923_v0 = vld [vmem:[%s2344_s14 + $0x30] sm:$0xff]  ;;  %s1679_s14 = smov [#allocation15]  }
 0x3e3   :  { %384 = vadd.xlane.f32.xlu0 %v383_v30  ;;  %1356 = vmatprep.subr.bf16.mxu1 %v1674_v1  ;;  %v1363_v44 = vpack.c.bf16 %v924_v41, %v923_v0  ;;  %s1021_s26 = sshll.u32 %s1679_s14, 4  ;;  %s1022_s26 = int_to_ptr.vmem [resolvable:$true] %s1021_s26 }
 0x3e4   :  { %s1560_s10 = scalar_lea.vmem %s1022_s26, 32  ;;  %p1565_p1 = scmp.lt.s32.totalorder %s1022_s26, %s1022_s26 }
 0x3e5   :  { %p1561_p0 = scmp.ne.s32.totalorder %s1022_s26, %s1560_s10  ;;  %p1566_p2 = scmp.lt.s32.totalorder %s1560_s10, %s1560_s10 }
 0x3e6   :  { %1358 = vmatpush3.bf16.msra.mxu1 %v1357_v33 }
 0x3e7   :  { %1359 = vmatprep.subr.bf16.mxu1 %v1674_v1  ;;  %p1567_p3 = por %p1566_p2, %p1565_p1 }
 0x3e9   :  { %p1568_p4 = pnand %p1567_p3, %p1561_p0 }
 0x3ea   :  { %1361 = vmatpush3.bf16.msra.mxu1 %v1360_v39 }
 0x3eb   :  { %1362 = vmatprep.subr.bf16.mxu1 %v1674_v1 }
 0x3ee   :  { %1364 = vmatpush3.bf16.msra.mxu1 %v1363_v44 }
 0x3ef   :  { %1365 = vmatprep.subr.bf16.mxu1 %v1674_v1 }
 0x3f2   :  { %1367 = vmatpush3.bf16.msra.mxu1 %v1366_v59 }
 0x3f3   :  { %1368 = vmatprep.subr.bf16.mxu1 %v1674_v1 }
 0x3f6   :  { %1370 = vmatpush3.bf16.msra.mxu1 %v1369_v52 }
 0x3f7   :  { %1371 = vmatprep.subr.bf16.mxu1 %v1674_v1 }
 0x3fa   :  { %1373 = vmatpush3.bf16.msra.mxu1 %v1372_v55 }
 0x3fb   :  { %1374 = vmatprep.subr.bf16.mxu1 %v1674_v1 }
 0x3fe   :  { %1376 = vmatpush3.bf16.msra.mxu1 %v1375_v60 }
 0x408   :  { %v357_v61 = vpop.xlane.xlu0 %356 }
 0x409   :  { %v387_v2 = vsel %vm386_vm6, %v357_v61, %v361_v63 }
 0x468   :  { %v365_v62 = vpop.xlane.xlu0 %364 }
 0x469   :  { %v389_v3 = vsel %vm388_vm7, %v387_v2, %v365_v62 }
 0x46c   :  { %v372_v4 = vpop.xlane.xlu0 %371 }
 0x46d   :  { %v391_v1 = vsel %vm390_vm8, %v389_v3, %v372_v4 }
 0x46e   :  { %v393_v6 = vsel %vm392_vm9, %v391_v1, %v379_v5 }
 0x470   :  { %v385_v7 = vpop.xlane.xlu0 %384 }
 0x471   :  { %v395_v8 = vsel %vm394_vm10, %v393_v6, %v385_v7 }
 0x472   :  { %397 = vst.msk [vmem:[#allocation17] sm:$0x3] %vm396_vm11, %v395_v8 }
 0x4b4   :  { %v912_v9 = vpop.f32.mrb[6].mxu1 }
 0x4b5   :  { %v916_v10 = vmul.f32 %v912_v9, %v1883_v58  ;;  %v1171_v11 = vpop.f32.mrb[7].mxu1 }
 0x4b7   :  { %1205 = vmatmul.mubr.f32.vlgmr.msra.gmra.mrb[8].mxu1 %v916_v10 }
 0x4b8   :  { %1571 = shalt.err (!%p1568_p4)
}
 0x4b9   :  { %s1572_s9 = scalar_lea.hbm %s2346_s16, 32 }
 0x4ba   :  { %p1573_p5 = scmp.ne.s32.totalorder %s2346_s16, %s1572_s9  ;;  %p1576_p6 = scmp.lt.u32.totalorder %s1572_s9, %s2346_s16 }
 0x4bc   :  { %p1578_p7 = pnand %p1576_p6, %p1573_p5 }
 0x4be   :  { %1581 = shalt.err (!%p1578_p7)
}
 0x4bf   :  { %1024 = dma.vmem_to_hbm [thread:$0]  %s1022_s26, 32, %s2346_s16, [#allocation16]  }
 0x4c0   :  { %s1582_s27 = scalar_lea.vmem %s1012_s22, 32  ;;  %p1587_p9 = scmp.lt.s32.totalorder %s1012_s22, %s1012_s22 }
 0x4c1   :  { %p1583_p8 = scmp.ne.s32.totalorder %s1012_s22, %s1582_s27  ;;  %p1588_p10 = scmp.lt.s32.totalorder %s1582_s27, %s1582_s27 }
 0x4c3   :  { %p1589_p11 = por %p1588_p10, %p1587_p9 }
 0x4c5   :  { %p1590_p12 = pnand %p1589_p11, %p1583_p8 }
 0x4c7   :  { %1593 = shalt.err (!%p1590_p12)
}
 0x4c8   :  { %s1594_s29 = scalar_lea.hbm %s2345_s15, 32 }
 0x4c9   :  { %p1595_p13 = scmp.ne.s32.totalorder %s2345_s15, %s1594_s29  ;;  %p1598_p0 = scmp.lt.u32.totalorder %s1594_s29, %s2345_s15 }
 0x4cb   :  { %p1600_p1 = pnand %p1598_p0, %p1595_p13 }
 0x4cd   :  { %1603 = shalt.err (!%p1600_p1)
}
 0x4ce   :  { %1014 = dma.vmem_to_hbm [thread:$0]  %s1012_s22, 32, %s2345_s15, [#allocation4]  }
 0x4cf   :  { %s1681_s13 = smov [#allocation17]  }
 0x4d0   :  { %s1031_s20 = sshll.u32 %s1681_s13, 4  ;;  %s1032_s20 = int_to_ptr.vmem [resolvable:$true] %s1031_s20 }
 0x4d1   :  { %s1604_s7 = scalar_lea.vmem %s1032_s20, 32  ;;  %p1609_p3 = scmp.lt.s32.totalorder %s1032_s20, %s1032_s20 }
 0x4d2   :  { %p1605_p2 = scmp.ne.s32.totalorder %s1032_s20, %s1604_s7  ;;  %p1610_p4 = scmp.lt.s32.totalorder %s1604_s7, %s1604_s7 }
 0x4d4   :  { %p1611_p5 = por %p1610_p4, %p1609_p3 }
 0x4d6   :  { %p1612_p6 = pnand %p1611_p5, %p1605_p2 }
 0x4d8   :  { %1615 = shalt.err (!%p1612_p6)
}
 0x4d9   :  { %s1616_s14 = scalar_lea.hbm %s2347_s17, 32 }
 0x4da   :  { %p1617_p7 = scmp.ne.s32.totalorder %s2347_s17, %s1616_s14  ;;  %p1620_p8 = scmp.lt.u32.totalorder %s1616_s14, %s2347_s17 }
 0x4dc   :  { %p1622_p9 = pnand %p1620_p8, %p1617_p7 }
 0x4de   :  { %1625 = shalt.err (!%p1622_p9)
}
 0x4df   :  { %1034 = dma.vmem_to_hbm [thread:$0]  %s1032_s20, 32, %s2347_s17, [#allocation16]   ;;  %vm1003_vm12 = vcmask 123904  }
 0x4e0   :  { %s1682_s28 = smov [#allocation18]  }
 0x4e1   :  { %s1041_s9 = sshll.u32 %s1682_s28, 4  ;;  %s1042_s9 = int_to_ptr.vmem [resolvable:$true] %s1041_s9 }
 0x4e2   :  { %s1626_s6 = scalar_lea.vmem %s1042_s9, 32  ;;  %p1631_p11 = scmp.lt.s32.totalorder %s1042_s9, %s1042_s9 }
 0x4e3   :  { %p1627_p10 = scmp.ne.s32.totalorder %s1042_s9, %s1626_s6  ;;  %p1632_p12 = scmp.lt.s32.totalorder %s1626_s6, %s1626_s6 }
 0x4e5   :  { %p1633_p13 = por %p1632_p12, %p1631_p11 }
 0x4e7   :  { %p1634_p0 = pnand %p1633_p13, %p1627_p10 }
 0x58a   :  { %v999_v58 = vpop.f32.mrb[8].mxu1 }
 0x58b   :  { %v1206_v12 = vpop.f32.mrb[9].mxu1  ;;  %1004 = vst.msk [vmem:[#allocation18] sm:$0x3] %vm1003_vm12, %v999_v58 }
 0x58c   :  { %1637 = shalt.err (!%p1634_p0)
}
 0x58d   :  { %s2359_s3 = sld [smem:[#allocation30_spill]] }
 0x593   :  { %s1638_s2 = scalar_lea.hbm %s2359_s3, 32 }
 0x594   :  { %p1639_p1 = scmp.ne.s32.totalorder %s2359_s3, %s1638_s2  ;;  %p1642_p2 = scmp.lt.u32.totalorder %s1638_s2, %s2359_s3 }
 0x596   :  { %p1644_p3 = pnand %p1642_p2, %p1639_p1 }
 0x598   :  { %1647 = shalt.err (!%p1644_p3)
}
 0x599   :  { %1044 = dma.vmem_to_hbm [thread:$0]  %s1042_s9, 32, %s2359_s3, [#allocation19]  }
 0x59a   :  { %1656 = dma.done.wait [#allocation4], 32  }
 0x59b   :  { %1657 = vsyncadd [#allocation4], 4294967264 }
 0x59c   :  { %1658 = dma.done.wait [#allocation16], 64  }
 0x59d   :  { %1659 = vsyncadd [#allocation16], 4294967232 }
 0x59e   :  { %1660 = dma.done.wait [#allocation19], 32  }
 0x59f   :  { %1661 = vsyncadd [#allocation19], 4294967264 }
 0x5a0   :  { %1057 = vsyncpa [#allocation3], 1 }
 0x5a1   :  { %1058 = vsyncpa [#allocation6], 1 }
 0x5a2   :  { %1059 = vsyncpa [#allocation9], 1 }
 0x5a3   :  { %1060 = vsyncpa [#allocation12], 1 }
 0x5a4   :  { %1061 = vsyncpa [#allocation4], 1 }
 0x5a5   :  { %1062 = vsyncpa [#allocation16], 1 }
 0x5a6   :  { %1063 = vsyncpa [#allocation19], 1 }

</bundles_post_ra>
